<compile_context>
chip_gen: v7x
topology: tpu7x:2x2x1
jax: 0.10.0
libtpu: 0.0.40
codegen_flags: <defaults>
</compile_context>

<pallas_src>
import functools

import jax
import jax.numpy as jnp
import numpy as np
from jax.experimental import pallas as pl
from jax.experimental.pallas import tpu as pltpu


# ---------------------------------------------------------------------------
# Fused kernel: whole YOLOMini forward for G images per grid step.
# ---------------------------------------------------------------------------
def _yolomini_kernel(x_ref, w1_ref, b1_ref, w2_ref, b2_ref, w3_ref, b3_ref,
                     r1e_ref, r1o_ref, r2e_ref, r2o_ref, rh_ref,
                     wh_ref, bh_ref, out_ref, p1_ref, p2_ref):
    f32, bf16 = jnp.float32, jnp.bfloat16

    def conv3x3_relu(load, w_ref, b_ref):
        # "same" 3x3 conv as three row-shifted MXU matmuls (bf16 x bf16 -> f32
        # accumulation); the kx taps + x zero-padding live in the folded
        # weights, the y zero-padding is physical zero rows in the LHS slab.
        acc = jnp.dot(load(0), w_ref[0], preferred_element_type=f32)
        acc = acc + jnp.dot(load(1), w_ref[1], preferred_element_type=f32)
        acc = acc + jnp.dot(load(2), w_ref[2], preferred_element_type=f32)
        return jnp.maximum(acc + b_ref[...], 0.0)          # bias + ReLU in f32

    def maxpool2(z, sel_e_ref, sel_o_ref):
        # x-pair max: even-x outputs sit in lanes [0, N/2), odd-x outputs in
        # [N/2, N) (chosen by the host-side weight fold), so the pair max is a
        # plain elementwise max of two aligned lane halves (VPU, no matmul)
        # and the result is already compacted to width N/2.
        n2 = z.shape[-1] // 2
        colmax = jnp.maximum(z[:, :n2], z[:, n2:]).astype(bf16)
        # y-pair max + per-image zero re-padding for the next conv via two
        # small host-built 0/1 selection matmuls (exact in bf16).
        return jnp.maximum(
            jnp.dot(sel_e_ref[...], colmax, preferred_element_type=f32),
            jnp.dot(sel_o_ref[...], colmax, preferred_element_type=f32))

    m1 = x_ref.shape[1] - 2          # conv1 output rows (image-stacked)
    m2 = p1_ref.shape[0] - 2         # conv2 output rows
    m3 = p2_ref.shape[0] - 2         # conv3 output rows

    # ---- stage 1: conv1 + relu + maxpool ---------------------------------
    # TODO(synk): keep the activation slabs bf16-resident (bf16 input + bf16
    # scratch) once unaligned packed-row loads are exercised; for now the
    # per-tap f32->bf16 casts are negligible at these sizes and proven-safe.
    z1 = conv3x3_relu(lambda ky: x_ref[0, ky:ky + m1, :].astype(bf16),
                      w1_ref, b1_ref)                       # (m1, 16W)
    p1_ref[...] = maxpool2(z1, r1e_ref, r1o_ref)            # (G*(H/2+2), 16*W/2)

    # ---- stage 2: conv2 + relu + maxpool ---------------------------------
    z2 = conv3x3_relu(lambda ky: p1_ref[ky:ky + m2, :].astype(bf16),
                      w2_ref, b2_ref)                       # (m2, 32*W/2)
    p2_ref[...] = maxpool2(z2, r2e_ref, r2o_ref)            # (G*(H/4+2), 32*W/4)

    # ---- stage 3: conv3 + relu -------------------------------------------
    z3 = conv3x3_relu(lambda ky: p2_ref[ky:ky + m3, :].astype(bf16),
                      w3_ref, b3_ref)                       # (m3, 64*W/4)

    # ---- global average pool + fused heads --------------------------------
    # Per-image spatial row-sum via a tiny 0/1 selection matmul; the x-sum and
    # the 1/(H3*W3) scale are folded into wh.  One lane-dense head matmul.
    feats = jnp.dot(rh_ref[...], z3.astype(bf16), preferred_element_type=f32)
    head = jnp.dot(feats.astype(bf16), wh_ref[...], preferred_element_type=f32)
    head = head + bh_ref[...]                               # (G, 128) f32

    lane = jax.lax.broadcasted_iota(jnp.int32, head.shape, 1)
    head = jnp.where(lane < 8, jax.nn.sigmoid(head), head)  # sigmoid: bbox lanes only
    out_ref[0] = head                                        # single (G, 128) store


# ---------------------------------------------------------------------------
# Host-built 0/1 selection matrices (bf16-exact): y-pair max + per-image zero
# re-padding for the next conv, and the per-image head row reduction.
# ---------------------------------------------------------------------------
def _make_selectors(group, H):
    H2, H3 = H // 2, H // 4
    hp1, hp2, hp3 = H + 2, H2 + 2, H3 + 2
    m1, m2, m3 = group * hp1 - 2, group * hp2 - 2, group * hp3 - 2

    def pool_sel(h_out, hp_in, hp_out, m_in):
        e = np.zeros((group * hp_out, m_in), np.float32)
        o = np.zeros((group * hp_out, m_in), np.float32)
        for g in range(group):
            for r in range(h_out):
                e[g * hp_out + 1 + r, g * hp_in + 2 * r] = 1.0
                o[g * hp_out + 1 + r, g * hp_in + 2 * r + 1] = 1.0
        return e, o

    r1e, r1o = pool_sel(H2, hp1, hp2, m1)
    r2e, r2o = pool_sel(H3, hp2, hp3, m2)
    rh = np.zeros((group, m3), np.float32)
    for g in range(group):
        rh[g, g * hp3:g * hp3 + H3] = 1.0
    return (jnp.asarray(r1e, jnp.bfloat16), jnp.asarray(r1o, jnp.bfloat16),
            jnp.asarray(r2e, jnp.bfloat16), jnp.asarray(r2o, jnp.bfloat16),
            jnp.asarray(rh, jnp.bfloat16))


def _make_cost_estimate(nsteps, group, H, W, operands, out_bytes):
    H2, H3, W2, W3 = H // 2, H // 4, W // 2, W // 4
    hp1, hp2, hp3 = H + 2, H2 + 2, H3 + 2
    m1, m2, m3 = group * hp1 - 2, group * hp2 - 2, group * hp3 - 2
    flops_step = (
        6 * m1 * (3 * W) * (16 * W)                 # conv1 (3 row-shifted matmuls)
        + 4 * (group * hp2) * m1 * (16 * W2)        # pool1 row-selection matmuls
        + 6 * m2 * (16 * W2) * (32 * W2)            # conv2
        + 4 * (group * hp3) * m2 * (32 * W3)        # pool2 row-selection matmuls
        + 6 * m3 * (32 * W3) * (64 * W3)            # conv3
        + 2 * group * m3 * (64 * W3)                # per-image spatial sum
        + 2 * group * (64 * W3) * 128)              # fused heads
    bytes_accessed = sum(int(a.size) * a.dtype.itemsize for a in operands) + out_bytes
    return pl.CostEstimate(flops=int(nsteps * flops_step),
                           transcendentals=int(nsteps * group * 8),
                           bytes_accessed=int(bytes_accessed))


# ---------------------------------------------------------------------------
# Wrapper: layout plumbing + pallas_call
# ---------------------------------------------------------------------------
@functools.partial(jax.jit, static_argnames=("num_classes", "group_size"))
def yolomini_forward(x_nchw, folded, *, num_classes=10, group_size=8):
    B, C, H, W = x_nchw.shape
    assert C == 3 and H % 4 == 0 and W % 4 == 0
    assert 10 + 2 * num_classes <= 128

    # Images per grid step (matmul-M batching).  group_size ~8 targets v5e
    # (M >= 128); use ~16 on v6e/v7x for M >= 256.  Keep nsteps even on v7x.
    group = min(B, group_size)
    nsteps = pl.cdiv(B, group)
    Bp = nsteps * group
    H2, H3, W2, W3 = H // 2, H // 4, W // 2, W // 4
    hp1, hp2, hp3 = H + 2, H2 + 2, H3 + 2
    m1, m2, m3 = group * hp1 - 2, group * hp2 - 2, group * hp3 - 2

    # Layout plumbing: NCHW -> (nsteps, G*(H+2), 3W) slab, col = c*W + x; each
    # image keeps its own top/bottom zero rows.
    # TODO(synk): accept a pre-laid-out slab from the caller to skip this extra
    # HBM pass (it is pure layout, no compute).
    xr = jnp.transpose(x_nchw.astype(jnp.float32), (0, 2, 1, 3)).reshape(B, H, C * W)
    xr = jnp.pad(xr, ((0, Bp - B), (1, 1), (0, 0)))
    xr = xr.reshape(nsteps, group * hp1, C * W)

    r1e, r1o, r2e, r2o, rh = _make_selectors(group, H)

    grid_spec = pltpu.PrefetchScalarGridSpec(
        num_scalar_prefetch=0,
        grid=(nsteps,),
        in_specs=[
            pl.BlockSpec((1, group * hp1, 3 * W), lambda s: (s, 0, 0)),   # image group
            # Weights / biases / selection matrices: constant blocks.
            # TODO(synk): for large W on v7x (64 MiB VMEM), drop the redundant
            # second pipeline buffer on these constant blocks or stage them
            # once via memory_space=pl.ANY + a manual copy.
            pl.BlockSpec((3, 3 * W, 16 * W), lambda s: (0, 0, 0)),        # conv1 fold
            pl.BlockSpec((1, 16 * W), lambda s: (0, 0)),
            pl.BlockSpec((3, 16 * W2, 32 * W2), lambda s: (0, 0, 0)),     # conv2 fold
            pl.BlockSpec((1, 32 * W2), lambda s: (0, 0)),
            pl.BlockSpec((3, 32 * W3, 64 * W3), lambda s: (0, 0, 0)),     # conv3 fold
            pl.BlockSpec((1, 64 * W3), lambda s: (0, 0)),
            pl.BlockSpec((group * hp2, m1), lambda s: (0, 0)),            # pool1 row sel
            pl.BlockSpec((group * hp2, m1), lambda s: (0, 0)),
            pl.BlockSpec((group * hp3, m2), lambda s: (0, 0)),            # pool2 row sel
            pl.BlockSpec((group * hp3, m2), lambda s: (0, 0)),
            pl.BlockSpec((group, m3), lambda s: (0, 0)),                  # head row sum
            pl.BlockSpec((64 * W3, 128), lambda s: (0, 0)),               # avgpool+heads
            pl.BlockSpec((1, 128), lambda s: (0, 0)),                     # head bias
        ],
        out_specs=pl.BlockSpec((1, group, 128), lambda s: (s, 0, 0)),
        scratch_shapes=[
            pltpu.VMEM((group * hp2, 16 * W2), jnp.float32),   # pooled stage-1 act
            pltpu.VMEM((group * hp3, 32 * W3), jnp.float32),   # pooled stage-2 act
        ],
    )

    operands = (xr, folded["w1"], folded["b1"], folded["w2"], folded["b2"],
                folded["w3"], folded["b3"], r1e, r1o, r2e, r2o, rh,
                folded["wh"], folded["bh"])

    # VMEM budget from the actual footprint (double-buffered blocks + slack),
    # capped at v7x's 64 MiB physical VMEM.
    out_bytes = nsteps * group * 128 * 4
    block_bytes = (sum(int(a.size) * a.dtype.itemsize for a in operands[1:])
                   + group * hp1 * 3 * W * 4 + group * 128 * 4)
    vmem_limit = int(min(64 << 20, max(32 << 20, 2 * block_bytes + (8 << 20))))

    out = pl.pallas_call(
        _yolomini_kernel,
        out_shape=jax.ShapeDtypeStruct((nsteps, group, 128), jnp.float32),
        grid_spec=grid_spec,
        compiler_params=pltpu.CompilerParams(
            dimension_semantics=("parallel",),        # dual-TC step sharding on v7x
            vmem_limit_bytes=vmem_limit),
        cost_estimate=_make_cost_estimate(nsteps, group, H, W, operands, out_bytes),
    )(*operands)

    head = out.reshape(nsteps * group, 128)[:B]
    bbox = head[:, 0:8].reshape(B, 2, 4)
    conf = head[:, 8:10]
    cls = head[:, 10:10 + 2 * num_classes].reshape(B, 2, num_classes)
    return bbox, conf, cls


# ---------------------------------------------------------------------------
# Parameters (PyTorch layout) + one-time host-side folding into kernel operands
# ---------------------------------------------------------------------------
def init_params(key, num_classes=10):
    ks = jax.random.split(key, 12)

    def conv_w(k, cout, cin):
        return 0.1 * jax.random.normal(k, (cout, cin, 3, 3), jnp.float32)

    def lin_w(k, cout, cin):
        return 0.1 * jax.random.normal(k, (cout, cin), jnp.float32)

    return {
        "conv1_w": conv_w(ks[0], 16, 3),
        "conv1_b": 0.01 * jax.random.normal(ks[1], (16,), jnp.float32),
        "conv2_w": conv_w(ks[2], 32, 16),
        "conv2_b": 0.01 * jax.random.normal(ks[3], (32,), jnp.float32),
        "conv3_w": conv_w(ks[4], 64, 32),
        "conv3_b": 0.01 * jax.random.normal(ks[5], (64,), jnp.float32),
        "bbox_w": lin_w(ks[6], 8, 64),
        "bbox_b": 0.01 * jax.random.normal(ks[7], (8,), jnp.float32),
        "conf_w": lin_w(ks[8], 2, 64),
        "conf_b": 0.01 * jax.random.normal(ks[9], (2,), jnp.float32),
        "cls_w": lin_w(ks[10], 2 * num_classes, 64),
        "cls_b": 0.01 * jax.random.normal(ks[11], (2 * num_classes,), jnp.float32),
    }


def fold_params(params, H, W):
    """Fold YOLOMini params (PyTorch layout) into the fused-kernel operands."""
    H3, W2, W3 = H // 4, W // 2, W // 4

    def split_cols(cout, width):
        # Output column permutation: even-x outputs -> lanes [0, cout*width/2),
        # odd-x outputs -> lanes [cout*width/2, cout*width).  Makes the
        # MaxPool2d x-pair max a plain elementwise max of two lane halves.
        def col(co, x):
            half = 0 if x % 2 == 0 else cout * (width // 2)
            return half + co * (width // 2) + x // 2
        return col

    def plain_cols(cout, width):
        def col(co, x):
            return co * width + x
        return col

    def fold_conv(w, b, width, out_col):
        # w: (Cout, Cin, 3, 3) -> (3, Cin*width, Cout*width): per-ky matrix
        # encoding the kx taps + x zero-padding; bias -> (1, Cout*width) row.
        w = np.asarray(w, np.float32)
        b = np.asarray(b, np.float32)
        cout, cin = w.shape[:2]
        wk = np.zeros((3, cin * width, cout * width), np.float32)
        brow = np.zeros((1, cout * width), np.float32)
        cols_by_x = [np.array([out_col(co, x) for co in range(cout)])
                     for x in range(width)]
        for x in range(width):
            brow[0, cols_by_x[x]] = b
        for ky in range(3):
            for kx in range(3):
                for xo in range(width):
                    xi = xo + kx - 1
                    if 0 <= xi < width:
                        rows = np.arange(cin) * width + xi
                        wk[ky][np.ix_(rows, cols_by_x[xo])] = w[:, :, ky, kx].T
        return wk, brow

    # TODO(synk): for W >= ~64 the block-structured fold is ~W/3x redundant in
    # FLOPs/VMEM; switch to a kx-unrolled (9 dense matmuls + lane shifts) form.
    w1, b1 = fold_conv(params["conv1_w"], params["conv1_b"], W, split_cols(16, W))
    w2, b2 = fold_conv(params["conv2_w"], params["conv2_b"], W2, split_cols(32, W2))
    w3, b3 = fold_conv(params["conv3_w"], params["conv3_b"], W3, plain_cols(64, W3))

    # Fold AdaptiveAvgPool2d((1,1)) + bbox/conf/class heads into one lane-dense
    # (64*W3, 128) matrix (zero-padded columns) + a bias row.
    wcat = np.concatenate([np.asarray(params["bbox_w"], np.float32),
                           np.asarray(params["conf_w"], np.float32),
                           np.asarray(params["cls_w"], np.float32)], axis=0).T
    bcat = np.concatenate([np.asarray(params["bbox_b"], np.float32),
                           np.asarray(params["conf_b"], np.float32),
                           np.asarray(params["cls_b"], np.float32)])
    nout = wcat.shape[1]
    wh = np.zeros((64 * W3, 128), np.float32)
    inv = 1.0 / float(H3 * W3)
    for x in range(W3):
        wh[np.arange(64) * W3 + x, :nout] = inv * wcat
    bh = np.zeros((1, 128), np.float32)
    bh[0, :nout] = bcat

    return {
        "w1": jnp.asarray(w1, jnp.bfloat16), "b1": jnp.asarray(b1),
        "w2": jnp.asarray(w2, jnp.bfloat16), "b2": jnp.asarray(b2),
        "w3": jnp.asarray(w3, jnp.bfloat16), "b3": jnp.asarray(b3),
        "wh": jnp.asarray(wh, jnp.bfloat16), "bh": jnp.asarray(bh),
    }


# ---------------------------------------------------------------------------
# Pure-JAX reference (matches the PyTorch module), used for a sanity check
# ---------------------------------------------------------------------------
def yolomini_reference(x_nchw, params, num_classes=10):
    def conv(x, w, b):
        y = jax.lax.conv_general_dilated(
            x, w, window_strides=(1, 1), padding="SAME",
            dimension_numbers=("NCHW", "OIHW", "NCHW"))
        return jax.nn.relu(y + b[None, :, None, None])

    def pool(x):
        B, C, H, W = x.shape
        return jnp.max(x.reshape(B, C, H // 2, 2, W // 2, 2), axis=(3, 5))

    h = pool(conv(x_nchw, params["conv1_w"], params["conv1_b"]))
    h = pool(conv(h, params["conv2_w"], params["conv2_b"]))
    h = conv(h, params["conv3_w"], params["conv3_b"])
    feat = jnp.mean(h, axis=(2, 3))
    bbox = jax.nn.sigmoid(feat @ params["bbox_w"].T + params["bbox_b"]).reshape(-1, 2, 4)
    conf = feat @ params["conf_w"].T + params["conf_b"]
    cls = (feat @ params["cls_w"].T + params["cls_b"]).reshape(-1, 2, num_classes)
    return bbox, conf, cls


if __name__ == "__main__":
    key = jax.random.PRNGKey(0)
    pkey, xkey = jax.random.split(key)
    num_classes = 10

    params = init_params(pkey, num_classes)
    x = jax.random.normal(xkey, (2, 3, 16, 16), jnp.float32)   # NCHW like PyTorch

    folded = fold_params(params, 16, 16)
    bbox, conf, cls = yolomini_forward(x, folded, num_classes=num_classes)
    jax.block_until_ready((bbox, conf, cls))

    assert bbox.shape == (2, 2, 4)
    assert conf.shape == (2, 2)
    assert cls.shape == (2, 2, num_classes)
    assert bool(jnp.all((bbox >= 0.0) & (bbox <= 1.0)))        # sigmoid range

    # Loose-tolerance check vs pure-JAX f32 reference (kernel runs bf16 conv
    # weights + bf16 inter-layer activations on the MXU with f32 accumulation).
    rb, rc, rk = yolomini_reference(x, params, num_classes)
    for got, ref in ((bbox, rb), (conf, rc), (cls, rk)):
        err = float(jnp.max(jnp.abs(got - ref)))
        assert err < 0.1, f"mismatch vs reference: max abs err {err}"

    print("KERNEL_OK")
</pallas_src>

<mosaic_0001>
module attributes {stable_mosaic.version = 11 : i64} {
  func.func @_yolomini_kernel(%arg0: i32, %arg1: memref<1x36x48xf32, #tpu.memory_space<vmem>>, %arg2: memref<3x48x256xbf16, #tpu.memory_space<vmem>>, %arg3: memref<1x256xf32, #tpu.memory_space<vmem>>, %arg4: memref<3x128x256xbf16, #tpu.memory_space<vmem>>, %arg5: memref<1x256xf32, #tpu.memory_space<vmem>>, %arg6: memref<3x128x256xbf16, #tpu.memory_space<vmem>>, %arg7: memref<1x256xf32, #tpu.memory_space<vmem>>, %arg8: memref<20x34xbf16, #tpu.memory_space<vmem>>, %arg9: memref<20x34xbf16, #tpu.memory_space<vmem>>, %arg10: memref<12x18xbf16, #tpu.memory_space<vmem>>, %arg11: memref<12x18xbf16, #tpu.memory_space<vmem>>, %arg12: memref<2x10xbf16, #tpu.memory_space<vmem>>, %arg13: memref<256x128xbf16, #tpu.memory_space<vmem>>, %arg14: memref<1x128xf32, #tpu.memory_space<vmem>>, %arg15: memref<1x2x128xf32, #tpu.memory_space<vmem>>, %arg16: memref<20x128xf32, #tpu.memory_space<vmem>>, %arg17: memref<12x128xf32, #tpu.memory_space<vmem>>) attributes {dimension_semantics = [#tpu.dimension_semantics<parallel>], iteration_bounds = array<i64: 1>, scalar_prefetch = 0 : i64, scratch_operands = 2 : i64, tpu.core_type = #tpu.core_type<tc>, window_params = [{transform_indices = @transform_0, window_bounds = array<i64: 1, 36, 48>}, {pipeline_mode = #tpu.pipeline_mode<synchronous>, transform_indices = @transform_1, window_bounds = array<i64: 3, 48, 256>}, {pipeline_mode = #tpu.pipeline_mode<synchronous>, transform_indices = @transform_2, window_bounds = array<i64: 1, 256>}, {pipeline_mode = #tpu.pipeline_mode<synchronous>, transform_indices = @transform_3, window_bounds = array<i64: 3, 128, 256>}, {pipeline_mode = #tpu.pipeline_mode<synchronous>, transform_indices = @transform_4, window_bounds = array<i64: 1, 256>}, {pipeline_mode = #tpu.pipeline_mode<synchronous>, transform_indices = @transform_5, window_bounds = array<i64: 3, 128, 256>}, {pipeline_mode = #tpu.pipeline_mode<synchronous>, transform_indices = @transform_6, window_bounds = array<i64: 1, 256>}, {pipeline_mode = #tpu.pipeline_mode<synchronous>, transform_indices = @transform_7, window_bounds = array<i64: 20, 34>}, {pipeline_mode = #tpu.pipeline_mode<synchronous>, transform_indices = @transform_8, window_bounds = array<i64: 20, 34>}, {pipeline_mode = #tpu.pipeline_mode<synchronous>, transform_indices = @transform_9, window_bounds = array<i64: 12, 18>}, {pipeline_mode = #tpu.pipeline_mode<synchronous>, transform_indices = @transform_10, window_bounds = array<i64: 12, 18>}, {pipeline_mode = #tpu.pipeline_mode<synchronous>, transform_indices = @transform_11, window_bounds = array<i64: 2, 10>}, {pipeline_mode = #tpu.pipeline_mode<synchronous>, transform_indices = @transform_12, window_bounds = array<i64: 256, 128>}, {pipeline_mode = #tpu.pipeline_mode<synchronous>, transform_indices = @transform_13, window_bounds = array<i64: 1, 128>}, {transform_indices = @transform_14, window_bounds = array<i64: 1, 2, 128>}]} {
    %c0 = arith.constant 0 : index
    %c0_0 = arith.constant 0 : index
    %c0_1 = arith.constant 0 : index
    %0 = vector.load %arg1[%c0, %c0_0, %c0_1] : memref<1x36x48xf32, #tpu.memory_space<vmem>>, vector<1x34x48xf32>
    %1 = vector.shape_cast %0 : vector<1x34x48xf32> to vector<34x48xf32>
    %2 = arith.truncf %1 : vector<34x48xf32> to vector<34x48xbf16>
    %c0_2 = arith.constant 0 : index
    %c0_3 = arith.constant 0 : index
    %c0_4 = arith.constant 0 : index
    %3 = vector.load %arg2[%c0_2, %c0_3, %c0_4] : memref<3x48x256xbf16, #tpu.memory_space<vmem>>, vector<1x48x256xbf16>
    %4 = vector.shape_cast %3 : vector<1x48x256xbf16> to vector<48x256xbf16>
    %cst = arith.constant dense<0.000000e+00> : vector<34x256xf32>
    %5 = tpu.matmul %2, %4, %cst {dimension_numbers = #tpu.dot_dimension_numbers<[1], [0], [0], [1], [0, 0, 1, 1], [], []>} : vector<34x48xbf16>, vector<48x256xbf16>, vector<34x256xf32> -> vector<34x256xf32>
    %c0_5 = arith.constant 0 : index
    %c1 = arith.constant 1 : index
    %c0_6 = arith.constant 0 : index
    %6 = vector.load %arg1[%c0_5, %c1, %c0_6] : memref<1x36x48xf32, #tpu.memory_space<vmem>>, vector<1x34x48xf32>
    %7 = vector.shape_cast %6 : vector<1x34x48xf32> to vector<34x48xf32>
    %8 = arith.truncf %7 : vector<34x48xf32> to vector<34x48xbf16>
    %c1_7 = arith.constant 1 : index
    %c0_8 = arith.constant 0 : index
    %c0_9 = arith.constant 0 : index
    %9 = vector.load %arg2[%c1_7, %c0_8, %c0_9] : memref<3x48x256xbf16, #tpu.memory_space<vmem>>, vector<1x48x256xbf16>
    %10 = vector.shape_cast %9 : vector<1x48x256xbf16> to vector<48x256xbf16>
    %cst_10 = arith.constant dense<0.000000e+00> : vector<34x256xf32>
    %11 = tpu.matmul %8, %10, %cst_10 {dimension_numbers = #tpu.dot_dimension_numbers<[1], [0], [0], [1], [0, 0, 1, 1], [], []>} : vector<34x48xbf16>, vector<48x256xbf16>, vector<34x256xf32> -> vector<34x256xf32>
    %12 = arith.addf %5, %11 : vector<34x256xf32>
    %c0_11 = arith.constant 0 : index
    %c2 = arith.constant 2 : index
    %c0_12 = arith.constant 0 : index
    %13 = vector.load %arg1[%c0_11, %c2, %c0_12] : memref<1x36x48xf32, #tpu.memory_space<vmem>>, vector<1x34x48xf32>
    %14 = vector.shape_cast %13 : vector<1x34x48xf32> to vector<34x48xf32>
    %15 = arith.truncf %14 : vector<34x48xf32> to vector<34x48xbf16>
    %c2_13 = arith.constant 2 : index
    %c0_14 = arith.constant 0 : index
    %c0_15 = arith.constant 0 : index
    %16 = vector.load %arg2[%c2_13, %c0_14, %c0_15] : memref<3x48x256xbf16, #tpu.memory_space<vmem>>, vector<1x48x256xbf16>
    %17 = vector.shape_cast %16 : vector<1x48x256xbf16> to vector<48x256xbf16>
    %cst_16 = arith.constant dense<0.000000e+00> : vector<34x256xf32>
    %18 = tpu.matmul %15, %17, %cst_16 {dimension_numbers = #tpu.dot_dimension_numbers<[1], [0], [0], [1], [0, 0, 1, 1], [], []>} : vector<34x48xbf16>, vector<48x256xbf16>, vector<34x256xf32> -> vector<34x256xf32>
    %19 = arith.addf %12, %18 : vector<34x256xf32>
    %c0_17 = arith.constant 0 : index
    %c0_18 = arith.constant 0 : index
    %20 = vector.load %arg3[%c0_17, %c0_18] : memref<1x256xf32, #tpu.memory_space<vmem>>, vector<1x256xf32>
    %21 = vector.broadcast %20 : vector<1x256xf32> to vector<34x256xf32>
    %22 = arith.addf %19, %21 : vector<34x256xf32>
    %cst_19 = arith.constant 0.000000e+00 : f32
    %23 = vector.broadcast %cst_19 : f32 to vector<34x256xf32>
    %24 = arith.maximumf %22, %23 : vector<34x256xf32>
    %25 = vector.extract_strided_slice %24 {offsets = [0, 0], sizes = [34, 128], strides = [1, 1]} : vector<34x256xf32> to vector<34x128xf32>
    %26 = vector.extract_strided_slice %24 {offsets = [0, 128], sizes = [34, 128], strides = [1, 1]} : vector<34x256xf32> to vector<34x128xf32>
    %27 = arith.maximumf %25, %26 : vector<34x128xf32>
    %28 = arith.truncf %27 : vector<34x128xf32> to vector<34x128xbf16>
    %c0_20 = arith.constant 0 : index
    %c0_21 = arith.constant 0 : index
    %29 = vector.load %arg8[%c0_20, %c0_21] : memref<20x34xbf16, #tpu.memory_space<vmem>>, vector<20x34xbf16>
    %cst_22 = arith.constant dense<0.000000e+00> : vector<20x128xf32>
    %30 = tpu.matmul %29, %28, %cst_22 {dimension_numbers = #tpu.dot_dimension_numbers<[1], [0], [0], [1], [0, 0, 1, 1], [], []>} : vector<20x34xbf16>, vector<34x128xbf16>, vector<20x128xf32> -> vector<20x128xf32>
    %c0_23 = arith.constant 0 : index
    %c0_24 = arith.constant 0 : index
    %31 = vector.load %arg9[%c0_23, %c0_24] : memref<20x34xbf16, #tpu.memory_space<vmem>>, vector<20x34xbf16>
    %cst_25 = arith.constant dense<0.000000e+00> : vector<20x128xf32>
    %32 = tpu.matmul %31, %28, %cst_25 {dimension_numbers = #tpu.dot_dimension_numbers<[1], [0], [0], [1], [0, 0, 1, 1], [], []>} : vector<20x34xbf16>, vector<34x128xbf16>, vector<20x128xf32> -> vector<20x128xf32>
    %33 = arith.maximumf %30, %32 : vector<20x128xf32>
    %c0_26 = arith.constant 0 : index
    %c0_27 = arith.constant 0 : index
    %34 = vector.load %arg16[%c0_26, %c0_27] : memref<20x128xf32, #tpu.memory_space<vmem>>, vector<20x128xf32>
    tpu.vector_store %arg16[%c0_26, %c0_27], %33 {strides = array<i32>} : memref<20x128xf32, #tpu.memory_space<vmem>>, vector<20x128xf32>,
    %c0_28 = arith.constant 0 : index
    %c0_29 = arith.constant 0 : index
    %35 = vector.load %arg16[%c0_28, %c0_29] : memref<20x128xf32, #tpu.memory_space<vmem>>, vector<18x128xf32>
    %36 = arith.truncf %35 : vector<18x128xf32> to vector<18x128xbf16>
    %c0_30 = arith.constant 0 : index
    %c0_31 = arith.constant 0 : index
    %c0_32 = arith.constant 0 : index
    %37 = vector.load %arg4[%c0_30, %c0_31, %c0_32] : memref<3x128x256xbf16, #tpu.memory_space<vmem>>, vector<1x128x256xbf16>
    %38 = vector.shape_cast %37 : vector<1x128x256xbf16> to vector<128x256xbf16>
    %cst_33 = arith.constant dense<0.000000e+00> : vector<18x256xf32>
    %39 = tpu.matmul %36, %38, %cst_33 {dimension_numbers = #tpu.dot_dimension_numbers<[1], [0], [0], [1], [0, 0, 1, 1], [], []>} : vector<18x128xbf16>, vector<128x256xbf16>, vector<18x256xf32> -> vector<18x256xf32>
    %c1_34 = arith.constant 1 : index
    %c0_35 = arith.constant 0 : index
    %40 = vector.load %arg16[%c1_34, %c0_35] : memref<20x128xf32, #tpu.memory_space<vmem>>, vector<18x128xf32>
    %41 = arith.truncf %40 : vector<18x128xf32> to vector<18x128xbf16>
    %c1_36 = arith.constant 1 : index
    %c0_37 = arith.constant 0 : index
    %c0_38 = arith.constant 0 : index
    %42 = vector.load %arg4[%c1_36, %c0_37, %c0_38] : memref<3x128x256xbf16, #tpu.memory_space<vmem>>, vector<1x128x256xbf16>
    %43 = vector.shape_cast %42 : vector<1x128x256xbf16> to vector<128x256xbf16>
    %cst_39 = arith.constant dense<0.000000e+00> : vector<18x256xf32>
    %44 = tpu.matmul %41, %43, %cst_39 {dimension_numbers = #tpu.dot_dimension_numbers<[1], [0], [0], [1], [0, 0, 1, 1], [], []>} : vector<18x128xbf16>, vector<128x256xbf16>, vector<18x256xf32> -> vector<18x256xf32>
    %45 = arith.addf %39, %44 : vector<18x256xf32>
    %c2_40 = arith.constant 2 : index
    %c0_41 = arith.constant 0 : index
    %46 = vector.load %arg16[%c2_40, %c0_41] : memref<20x128xf32, #tpu.memory_space<vmem>>, vector<18x128xf32>
    %47 = arith.truncf %46 : vector<18x128xf32> to vector<18x128xbf16>
    %c2_42 = arith.constant 2 : index
    %c0_43 = arith.constant 0 : index
    %c0_44 = arith.constant 0 : index
    %48 = vector.load %arg4[%c2_42, %c0_43, %c0_44] : memref<3x128x256xbf16, #tpu.memory_space<vmem>>, vector<1x128x256xbf16>
    %49 = vector.shape_cast %48 : vector<1x128x256xbf16> to vector<128x256xbf16>
    %cst_45 = arith.constant dense<0.000000e+00> : vector<18x256xf32>
    %50 = tpu.matmul %47, %49, %cst_45 {dimension_numbers = #tpu.dot_dimension_numbers<[1], [0], [0], [1], [0, 0, 1, 1], [], []>} : vector<18x128xbf16>, vector<128x256xbf16>, vector<18x256xf32> -> vector<18x256xf32>
    %51 = arith.addf %45, %50 : vector<18x256xf32>
    %c0_46 = arith.constant 0 : index
    %c0_47 = arith.constant 0 : index
    %52 = vector.load %arg5[%c0_46, %c0_47] : memref<1x256xf32, #tpu.memory_space<vmem>>, vector<1x256xf32>
    %53 = vector.broadcast %52 : vector<1x256xf32> to vector<18x256xf32>
    %54 = arith.addf %51, %53 : vector<18x256xf32>
    %cst_48 = arith.constant 0.000000e+00 : f32
    %55 = vector.broadcast %cst_48 : f32 to vector<18x256xf32>
    %56 = arith.maximumf %54, %55 : vector<18x256xf32>
    %57 = vector.extract_strided_slice %56 {offsets = [0, 0], sizes = [18, 128], strides = [1, 1]} : vector<18x256xf32> to vector<18x128xf32>
    %58 = vector.extract_strided_slice %56 {offsets = [0, 128], sizes = [18, 128], strides = [1, 1]} : vector<18x256xf32> to vector<18x128xf32>
    %59 = arith.maximumf %57, %58 : vector<18x128xf32>
    %60 = arith.truncf %59 : vector<18x128xf32> to vector<18x128xbf16>
    %c0_49 = arith.constant 0 : index
    %c0_50 = arith.constant 0 : index
    %61 = vector.load %arg10[%c0_49, %c0_50] : memref<12x18xbf16, #tpu.memory_space<vmem>>, vector<12x18xbf16>
    %cst_51 = arith.constant dense<0.000000e+00> : vector<12x128xf32>
    %62 = tpu.matmul %61, %60, %cst_51 {dimension_numbers = #tpu.dot_dimension_numbers<[1], [0], [0], [1], [0, 0, 1, 1], [], []>} : vector<12x18xbf16>, vector<18x128xbf16>, vector<12x128xf32> -> vector<12x128xf32>
    %c0_52 = arith.constant 0 : index
    %c0_53 = arith.constant 0 : index
    %63 = vector.load %arg11[%c0_52, %c0_53] : memref<12x18xbf16, #tpu.memory_space<vmem>>, vector<12x18xbf16>
    %cst_54 = arith.constant dense<0.000000e+00> : vector<12x128xf32>
    %64 = tpu.matmul %63, %60, %cst_54 {dimension_numbers = #tpu.dot_dimension_numbers<[1], [0], [0], [1], [0, 0, 1, 1], [], []>} : vector<12x18xbf16>, vector<18x128xbf16>, vector<12x128xf32> -> vector<12x128xf32>
    %65 = arith.maximumf %62, %64 : vector<12x128xf32>
    %c0_55 = arith.constant 0 : index
    %c0_56 = arith.constant 0 : index
    %66 = vector.load %arg17[%c0_55, %c0_56] : memref<12x128xf32, #tpu.memory_space<vmem>>, vector<12x128xf32>
    tpu.vector_store %arg17[%c0_55, %c0_56], %65 {strides = array<i32>} : memref<12x128xf32, #tpu.memory_space<vmem>>, vector<12x128xf32>,
    %c0_57 = arith.constant 0 : index
    %c0_58 = arith.constant 0 : index
    %67 = vector.load %arg17[%c0_57, %c0_58] : memref<12x128xf32, #tpu.memory_space<vmem>>, vector<10x128xf32>
    %68 = arith.truncf %67 : vector<10x128xf32> to vector<10x128xbf16>
    %c0_59 = arith.constant 0 : index
    %c0_60 = arith.constant 0 : index
    %c0_61 = arith.constant 0 : index
    %69 = vector.load %arg6[%c0_59, %c0_60, %c0_61] : memref<3x128x256xbf16, #tpu.memory_space<vmem>>, vector<1x128x256xbf16>
    %70 = vector.shape_cast %69 : vector<1x128x256xbf16> to vector<128x256xbf16>
    %cst_62 = arith.constant dense<0.000000e+00> : vector<10x256xf32>
    %71 = tpu.matmul %68, %70, %cst_62 {dimension_numbers = #tpu.dot_dimension_numbers<[1], [0], [0], [1], [0, 0, 1, 1], [], []>} : vector<10x128xbf16>, vector<128x256xbf16>, vector<10x256xf32> -> vector<10x256xf32>
    %c1_63 = arith.constant 1 : index
    %c0_64 = arith.constant 0 : index
    %72 = vector.load %arg17[%c1_63, %c0_64] : memref<12x128xf32, #tpu.memory_space<vmem>>, vector<10x128xf32>
    %73 = arith.truncf %72 : vector<10x128xf32> to vector<10x128xbf16>
    %c1_65 = arith.constant 1 : index
    %c0_66 = arith.constant 0 : index
    %c0_67 = arith.constant 0 : index
    %74 = vector.load %arg6[%c1_65, %c0_66, %c0_67] : memref<3x128x256xbf16, #tpu.memory_space<vmem>>, vector<1x128x256xbf16>
    %75 = vector.shape_cast %74 : vector<1x128x256xbf16> to vector<128x256xbf16>
    %cst_68 = arith.constant dense<0.000000e+00> : vector<10x256xf32>
    %76 = tpu.matmul %73, %75, %cst_68 {dimension_numbers = #tpu.dot_dimension_numbers<[1], [0], [0], [1], [0, 0, 1, 1], [], []>} : vector<10x128xbf16>, vector<128x256xbf16>, vector<10x256xf32> -> vector<10x256xf32>
    %77 = arith.addf %71, %76 : vector<10x256xf32>
    %c2_69 = arith.constant 2 : index
    %c0_70 = arith.constant 0 : index
    %78 = vector.load %arg17[%c2_69, %c0_70] : memref<12x128xf32, #tpu.memory_space<vmem>>, vector<10x128xf32>
    %79 = arith.truncf %78 : vector<10x128xf32> to vector<10x128xbf16>
    %c2_71 = arith.constant 2 : index
    %c0_72 = arith.constant 0 : index
    %c0_73 = arith.constant 0 : index
    %80 = vector.load %arg6[%c2_71, %c0_72, %c0_73] : memref<3x128x256xbf16, #tpu.memory_space<vmem>>, vector<1x128x256xbf16>
    %81 = vector.shape_cast %80 : vector<1x128x256xbf16> to vector<128x256xbf16>
    %cst_74 = arith.constant dense<0.000000e+00> : vector<10x256xf32>
    %82 = tpu.matmul %79, %81, %cst_74 {dimension_numbers = #tpu.dot_dimension_numbers<[1], [0], [0], [1], [0, 0, 1, 1], [], []>} : vector<10x128xbf16>, vector<128x256xbf16>, vector<10x256xf32> -> vector<10x256xf32>
    %83 = arith.addf %77, %82 : vector<10x256xf32>
    %c0_75 = arith.constant 0 : index
    %c0_76 = arith.constant 0 : index
    %84 = vector.load %arg7[%c0_75, %c0_76] : memref<1x256xf32, #tpu.memory_space<vmem>>, vector<1x256xf32>
    %85 = vector.broadcast %84 : vector<1x256xf32> to vector<10x256xf32>
    %86 = arith.addf %83, %85 : vector<10x256xf32>
    %cst_77 = arith.constant 0.000000e+00 : f32
    %87 = vector.broadcast %cst_77 : f32 to vector<10x256xf32>
    %88 = arith.maximumf %86, %87 : vector<10x256xf32>
    %c0_78 = arith.constant 0 : index
    %c0_79 = arith.constant 0 : index
    %89 = vector.load %arg12[%c0_78, %c0_79] : memref<2x10xbf16, #tpu.memory_space<vmem>>, vector<2x10xbf16>
    %90 = arith.truncf %88 : vector<10x256xf32> to vector<10x256xbf16>
    %cst_80 = arith.constant dense<0.000000e+00> : vector<2x256xf32>
    %91 = tpu.matmul %89, %90, %cst_80 {dimension_numbers = #tpu.dot_dimension_numbers<[1], [0], [0], [1], [0, 0, 1, 1], [], []>} : vector<2x10xbf16>, vector<10x256xbf16>, vector<2x256xf32> -> vector<2x256xf32>
    %92 = arith.truncf %91 : vector<2x256xf32> to vector<2x256xbf16>
    %c0_81 = arith.constant 0 : index
    %c0_82 = arith.constant 0 : index
    %93 = vector.load %arg13[%c0_81, %c0_82] : memref<256x128xbf16, #tpu.memory_space<vmem>>, vector<256x128xbf16>
    %cst_83 = arith.constant dense<0.000000e+00> : vector<2x128xf32>
    %94 = tpu.matmul %92, %93, %cst_83 {dimension_numbers = #tpu.dot_dimension_numbers<[1], [0], [0], [1], [0, 0, 1, 1], [], []>} : vector<2x256xbf16>, vector<256x128xbf16>, vector<2x128xf32> -> vector<2x128xf32>
    %c0_84 = arith.constant 0 : index
    %c0_85 = arith.constant 0 : index
    %95 = vector.load %arg14[%c0_84, %c0_85] : memref<1x128xf32, #tpu.memory_space<vmem>>, vector<1x128xf32>
    %96 = vector.broadcast %95 : vector<1x128xf32> to vector<2x128xf32>
    %97 = arith.addf %94, %96 : vector<2x128xf32>
    %98 = tpu.iota {dimensions = array<i32: 1>} : vector<2x128xi32>
    %c8_i32 = arith.constant 8 : i32
    %99 = vector.broadcast %c8_i32 : i32 to vector<2x128xi32>
    %100 = arith.cmpi slt, %98, %99 : vector<2x128xi32>
    %101 = arith.negf %97 : vector<2x128xf32>
    %102 = math.exp %101 : vector<2x128xf32>
    %cst_86 = arith.constant 1.000000e+00 : f32
    %103 = vector.broadcast %cst_86 : f32 to vector<2x128xf32>
    %104 = arith.addf %103, %102 : vector<2x128xf32>
    %105 = arith.divf %103, %104 : vector<2x128xf32>
    %106 = arith.select %100, %105, %97 : vector<2x128xi1>, vector<2x128xf32>
    %c0_87 = arith.constant 0 : index
    %c0_88 = arith.constant 0 : index
    %c0_89 = arith.constant 0 : index
    %107 = vector.load %arg15[%c0_87, %c0_88, %c0_89] : memref<1x2x128xf32, #tpu.memory_space<vmem>>, vector<1x2x128xf32>
    %108 = vector.shape_cast %107 : vector<1x2x128xf32> to vector<2x128xf32>
    %109 = vector.shape_cast %106 : vector<2x128xf32> to vector<1x2x128xf32>
    tpu.vector_store %arg15[%c0_87, %c0_88, %c0_89], %109 {strides = array<i32>} : memref<1x2x128xf32, #tpu.memory_space<vmem>>, vector<1x2x128xf32>,
    return
  }
  func.func @transform_0(%arg0: i32) -> (i32, i32, i32) {
    %c0_i32 = arith.constant 0 : i32
    %c0_i32_0 = arith.constant 0 : i32
    %c0_i32_1 = arith.constant 0 : i32
    return %arg0, %c0_i32, %c0_i32_0 : i32, i32, i32
  }
  func.func @transform_1(%arg0: i32) -> (i32, i32, i32) {
    %c0_i32 = arith.constant 0 : i32
    %c0_i32_0 = arith.constant 0 : i32
    %c0_i32_1 = arith.constant 0 : i32
    %c0_i32_2 = arith.constant 0 : i32
    return %c0_i32, %c0_i32_0, %c0_i32_1 : i32, i32, i32
  }
  func.func @transform_2(%arg0: i32) -> (i32, i32) {
    %c0_i32 = arith.constant 0 : i32
    %c0_i32_0 = arith.constant 0 : i32
    %c0_i32_1 = arith.constant 0 : i32
    return %c0_i32, %c0_i32_0 : i32, i32
  }
  func.func @transform_3(%arg0: i32) -> (i32, i32, i32) {
    %c0_i32 = arith.constant 0 : i32
    %c0_i32_0 = arith.constant 0 : i32
    %c0_i32_1 = arith.constant 0 : i32
    %c0_i32_2 = arith.constant 0 : i32
    return %c0_i32, %c0_i32_0, %c0_i32_1 : i32, i32, i32
  }
  func.func @transform_4(%arg0: i32) -> (i32, i32) {
    %c0_i32 = arith.constant 0 : i32
    %c0_i32_0 = arith.constant 0 : i32
    %c0_i32_1 = arith.constant 0 : i32
    return %c0_i32, %c0_i32_0 : i32, i32
  }
  func.func @transform_5(%arg0: i32) -> (i32, i32, i32) {
    %c0_i32 = arith.constant 0 : i32
    %c0_i32_0 = arith.constant 0 : i32
    %c0_i32_1 = arith.constant 0 : i32
    %c0_i32_2 = arith.constant 0 : i32
    return %c0_i32, %c0_i32_0, %c0_i32_1 : i32, i32, i32
  }
  func.func @transform_6(%arg0: i32) -> (i32, i32) {
    %c0_i32 = arith.constant 0 : i32
    %c0_i32_0 = arith.constant 0 : i32
    %c0_i32_1 = arith.constant 0 : i32
    return %c0_i32, %c0_i32_0 : i32, i32
  }
  func.func @transform_7(%arg0: i32) -> (i32, i32) {
    %c0_i32 = arith.constant 0 : i32
    %c0_i32_0 = arith.constant 0 : i32
    %c0_i32_1 = arith.constant 0 : i32
    return %c0_i32, %c0_i32_0 : i32, i32
  }
  func.func @transform_8(%arg0: i32) -> (i32, i32) {
    %c0_i32 = arith.constant 0 : i32
    %c0_i32_0 = arith.constant 0 : i32
    %c0_i32_1 = arith.constant 0 : i32
    return %c0_i32, %c0_i32_0 : i32, i32
  }
  func.func @transform_9(%arg0: i32) -> (i32, i32) {
    %c0_i32 = arith.constant 0 : i32
    %c0_i32_0 = arith.constant 0 : i32
    %c0_i32_1 = arith.constant 0 : i32
    return %c0_i32, %c0_i32_0 : i32, i32
  }
  func.func @transform_10(%arg0: i32) -> (i32, i32) {
    %c0_i32 = arith.constant 0 : i32
    %c0_i32_0 = arith.constant 0 : i32
    %c0_i32_1 = arith.constant 0 : i32
    return %c0_i32, %c0_i32_0 : i32, i32
  }
  func.func @transform_11(%arg0: i32) -> (i32, i32) {
    %c0_i32 = arith.constant 0 : i32
    %c0_i32_0 = arith.constant 0 : i32
    %c0_i32_1 = arith.constant 0 : i32
    return %c0_i32, %c0_i32_0 : i32, i32
  }
  func.func @transform_12(%arg0: i32) -> (i32, i32) {
    %c0_i32 = arith.constant 0 : i32
    %c0_i32_0 = arith.constant 0 : i32
    %c0_i32_1 = arith.constant 0 : i32
    return %c0_i32, %c0_i32_0 : i32, i32
  }
  func.func @transform_13(%arg0: i32) -> (i32, i32) {
    %c0_i32 = arith.constant 0 : i32
    %c0_i32_0 = arith.constant 0 : i32
    %c0_i32_1 = arith.constant 0 : i32
    return %c0_i32, %c0_i32_0 : i32, i32
  }
  func.func @transform_14(%arg0: i32) -> (i32, i32, i32) {
    %c0_i32 = arith.constant 0 : i32
    %c0_i32_0 = arith.constant 0 : i32
    %c0_i32_1 = arith.constant 0 : i32
    return %arg0, %c0_i32, %c0_i32_0 : i32, i32, i32
  }
}

</mosaic_0001>

<bundles_post_ra>
// kernel: yolomini_forward.1
= control target key start
LH: loop header
LB: loop body
LE: loop exit
PB: predicated region body
PF: predicated region fallthrough
CT: control target
= control target key end

     0   :  { %19 = vsyncpa [#allocation5], 0  ;;  %s2920_s0 = inlined_call_operand.vmem [shape: f32[1,36,48], index: 0, kind: input, shape index: {}]   ;;  %s2921_s1 = inlined_call_operand.vmem [shape: bf16[3,48,256], index: 1, kind: input, shape index: {}]   ;;  %s2922_s2 = inlined_call_operand.vmem [shape: f32[1,256], index: 2, kind: input, shape index: {}]   ;;  %s2923_s3 = inlined_call_operand.vmem [shape: bf16[3,128,256], index: 3, kind: input, shape index: {}]   ;;  %s2924_s4 = inlined_call_operand.vmem [shape: f32[1,256], index: 4, kind: input, shape index: {}]   ;;  %s2925_s5 = inlined_call_operand.hbm [shape: bf16[3,128,256], index: 5, kind: input, shape index: {}]   ;;  %s2926_s6 = inlined_call_operand.vmem [shape: f32[1,256], index: 6, kind: input, shape index: {}]   ;;  %s2927_s7 = inlined_call_operand.vmem [shape: bf16[20,34], index: 7, kind: input, shape index: {}]   ;;  %s2928_s8 = inlined_call_operand.vmem [shape: bf16[20,34], index: 8, kind: input, shape index: {}]   ;;  %s2929_s9 = inlined_call_operand.vmem [shape: bf16[12,18], index: 9, kind: input, shape index: {}]   ;;  %s2930_s10 = inlined_call_operand.vmem [shape: bf16[12,18], index: 10, kind: input, shape index: {}]   ;;  %s2931_s11 = inlined_call_operand.vmem [shape: bf16[2,10], index: 11, kind: input, shape index: {}]   ;;  %s2932_s12 = inlined_call_operand.hbm [shape: bf16[256,128], index: 12, kind: input, shape index: {}]   ;;  %s2933_s13 = inlined_call_operand.vmem [shape: f32[1,128], index: 13, kind: input, shape index: {}]   ;;  %s2934_s14 = inlined_call_operand.vmem [shape: f32[1,2,128], index: 14, kind: output, shape index: {}]  }
   0x1   :  { %20 = vsyncpa [#allocation7], 0  ;;  %s2483_s29 = smov [#allocation4]   ;;  %s2435_s17 = scalar_lea.hbm %s2925_s5, 6144 }
   0x2   :  { %s36_s30 = sshll.u32 %s2483_s29, 4  ;;  %p2436_p0 = scmp.ne.s32.totalorder %s2925_s5, %s2435_s17  ;;  %s37_s30 = int_to_ptr.vmem [resolvable:$true] %s36_s30 }
   0x3   :  { %p2439_p1 = scmp.lt.u32.totalorder %s2435_s17, %s2925_s5 }
   0x5   :  { %p2441_p2 = pnand %p2439_p1, %p2436_p0 }
   0x7   :  { %2444 = shalt.err (!%p2441_p2)
}
   0x8   :  { %s2445_s22 = scalar_lea.vmem %s37_s30, 6144  ;;  %p2450_p4 = scmp.lt.s32.totalorder %s37_s30, %s37_s30 }
   0x9   :  { %p2446_p3 = scmp.ne.s32.totalorder %s37_s30, %s2445_s22  ;;  %p2451_p5 = scmp.lt.s32.totalorder %s2445_s22, %s2445_s22 }
   0xb   :  { %p2452_p6 = por %p2451_p5, %p2450_p4 }
   0xd   :  { %p2453_p7 = pnand %p2452_p6, %p2446_p3 }
   0xf   :  { %2456 = shalt.err (!%p2453_p7)
}
  0x10   :  { %s2484_s23 = smov 128   ;;  %s2485_s24 = smov 8  }
  0x11   :  { %42 = dma.hbm_to_vmem [thread:$0]  %s2925_s5, 6144, %s37_s30, [#allocation5], %s2484_s23, %s2484_s23, %s2485_s24  }
  0x12   :  { %s2486_s27 = smov [#allocation6]   ;;  %s2457_s16 = scalar_lea.hbm %s2932_s12, 2048 }
  0x13   :  { %s60_s28 = sshll.u32 %s2486_s27, 4  ;;  %p2458_p8 = scmp.ne.s32.totalorder %s2932_s12, %s2457_s16  ;;  %s61_s28 = int_to_ptr.vmem [resolvable:$true] %s60_s28 }
  0x14   :  { %p2461_p9 = scmp.lt.u32.totalorder %s2457_s16, %s2932_s12 }
  0x16   :  { %p2463_p10 = pnand %p2461_p9, %p2458_p8 }
  0x18   :  { %2466 = shalt.err (!%p2463_p10)
}
  0x19   :  { %s2467_s21 = scalar_lea.vmem %s61_s28, 2048  ;;  %p2472_p12 = scmp.lt.s32.totalorder %s61_s28, %s61_s28 }
  0x1a   :  { %p2468_p11 = scmp.ne.s32.totalorder %s61_s28, %s2467_s21  ;;  %p2473_p13 = scmp.lt.s32.totalorder %s2467_s21, %s2467_s21 }
  0x1c   :  { %p2474_p0 = por %p2473_p13, %p2472_p12 }
  0x1e   :  { %p2475_p1 = pnand %p2474_p0, %p2468_p11 }
  0x20   :  { %2478 = shalt.err (!%p2475_p1)
}
  0x21   :  { %s2487_s5 = smov 64   ;;  %s2488_s30 = smov 4  }
  0x22   :  { %66 = dma.hbm_to_vmem [thread:$0]  %s2932_s12, 2048, %s61_s28, [#allocation7], %s2487_s5, %s2487_s5, %s2488_s30  }
  0x23   :  { %2479 = dma.done.wait [#allocation5], 6144  }
  0x24   :  { %2480 = vsyncadd [#allocation5], 4294961152 }
  0x25   :  { %2481 = dma.done.wait [#allocation7], 2048  }
  0x26   :  { %2482 = vsyncadd [#allocation7], 4294965248  ;;  %v2489_v0 = vmov 0   ;;  %v2238_v1 = vld [vmem:[%s2921_s1 + $0x34] ss:$8 sps:$4 sm:$0xff]   ;;  %v90_v7 = vld [vmem:[%s2920_s0 + $0x1] sm:$0xff]  ;;  %v433_v48 = vlaneseq }
  0x27   :  { %177 = vmatprep.mubr.bf16.mxu0 %v2489_v0  ;;  %197 = vmatprep.mubr.bf16.mxu1 %v2489_v0  ;;  %v2240_v2 = vld [vmem:[%s2921_s1 + $0x30] ss:$8 sps:$4 sm:$0xff]   ;;  %v2241_v3 = vld [vmem:[%s2921_s1 + $0x44] ss:$8 sps:$4 sm:$0xff]   ;;  %v2243_v4 = vld [vmem:[%s2921_s1 + $0x40] ss:$8 sps:$4 sm:$0xff]  }
  0x28   :  { %145 = vmatprep.subr.bf16.mxu0 %v2238_v1  ;;  %2189 = vmatprep.subr.bf16.mxu1 %v2238_v1  ;;  %v2244_v5 = vld [vmem:[%s2921_s1 + $0x54] ss:$8 sps:$4 sm:$0xff]   ;;  %v2246_v6 = vld [vmem:[%s2921_s1 + $0x50] ss:$8 sps:$4 sm:$0xff]   ;;  %v2249_v9 = vld [vmem:[%s2921_s1 + $0x4] ss:$8 sps:$4 sm:$0xff]  }
  0x29   :  { %146 = vmatpush1.bf16.msra.mxu0 %v2240_v2  ;;  %2192 = vmatpush1.bf16.msra.mxu1 %v2240_v2  ;;  %v91_v8 = vld [vmem:[%s2920_s0 + $0x9] sm:$0xff]  ;;  %vm135_vm0 = vcmask 392192   ;;  %v2252_v12 = vld [vmem:[%s2921_s1 + $0x14] ss:$8 sps:$4 sm:$0xff]   ;;  %v94_v13 = vld [vmem:[%s2920_s0 + $0x21] sm:$0x3] }
  0x2a   :  { %147 = vmatprep.subr.bf16.mxu0 %v2241_v3  ;;  %2190 = vmatprep.subr.bf16.mxu1 %v2241_v3  ;;  %v95_v10 = vpack.c.bf16 %v91_v8, %v90_v7  ;;  %v2247_v11 = vld [vmem:[%s2921_s1] ss:$8 sps:$4 sm:$0xff]   ;;  %v97_v14 = vpack.c.bf16 %v94_v13, %v94_v13  ;;  %v92_v15 = vld [vmem:[%s2920_s0 + $0x11] sm:$0xff]  ;;  %v2255_v18 = vld [vmem:[%s2921_s1 + $0x24] ss:$8 sps:$4 sm:$0xff]   ;;  %vm482_vm1 = vcmask 277504  }
  0x2b   :  { %v93_v16 = vld [vmem:[%s2920_s0 + $0x19] sm:$0xff]  ;;  %v2258_v21 = vld [vmem:[%s2921_s1 + $0x64] ss:$8 sps:$4 sm:$0xff]   ;;  %v78_v27 = vld [vmem:[%s2920_s0 + $0x10] sm:$0xff]  ;;  %v434_v49 = vshrl.u32 %v433_v48, 7  ;;  %vm489_vm2 = vcmask 1040384  }
  0x2c   :  { %v2250_v17 = vld [vmem:[%s2921_s1 + $0x10] ss:$8 sps:$4 sm:$0xff]   ;;  %v2253_v19 = vld [vmem:[%s2921_s1 + $0x20] ss:$8 sps:$4 sm:$0xff]   ;;  %v96_v20 = vpack.c.bf16 %v93_v16, %v92_v15  ;;  %v2261_v26 = vld [vmem:[%s2921_s1 + $0x74] ss:$8 sps:$4 sm:$0xff]  }
  0x2d   :  { %148 = vmatpush1.bf16.msra.mxu0 %v2243_v4  ;;  %2193 = vmatpush1.bf16.msra.mxu1 %v2243_v4  ;;  %v76_v22 = vld [vmem:[%s2920_s0] sm:$0xff]  ;;  %v77_v23 = vld [vmem:[%s2920_s0 + $0x8] sm:$0xff]  ;;  %v79_v28 = vld [vmem:[%s2920_s0 + $0x18] sm:$0xff]  ;;  %v2713_v53 = vsub.s32 0, %v434_v49  ;;  %v2718_v57 = vsub.s32 1, %v434_v49  ;;  %vm2491_vm3 = vmmov 0  }
  0x2e   :  { %149 = vmatprep.subr.bf16.mxu0 %v2244_v5  ;;  %2191 = vmatprep.subr.bf16.mxu1 %v2244_v5  ;;  %v2256_v24 = vld [vmem:[%s2921_s1 + $0x60] ss:$8 sps:$4 sm:$0xff]   ;;  %v81_v25 = vpack.c.bf16 %v77_v23, %v76_v22  ;;  %v2259_v29 = vld [vmem:[%s2921_s1 + $0x70] ss:$8 sps:$4 sm:$0xff]   ;;  %v2264_v30 = vld [vmem:[%s2921_s1 + $0x84] ss:$8 sps:$4 sm:$0xff]   ;;  %v82_v32 = vpack.c.bf16 %v79_v28, %v78_v27 }
  0x2f   :  { %v2262_v31 = vld [vmem:[%s2921_s1 + $0x80] ss:$8 sps:$4 sm:$0xff]   ;;  %v308_v38 = vld [vmem:[%s2920_s0 + $0x12] sm:$0xff]  ;;  %v2277_v49 = vld [vmem:[%s2923_s3 + $0xa4] ss:$8 sps:$4 sm:$0xff]   ;;  %vm1112_vm4 = vcmask 146432  }
  0x30   :  { %v80_v33 = vld [vmem:[%s2920_s0 + $0x20] sm:$0x3]  ;;  %v306_v35 = vld [vmem:[%s2920_s0 + $0x2] sm:$0xff]  ;;  %v307_v36 = vld [vmem:[%s2920_s0 + $0xa] sm:$0xff]  ;;  %vm1674_vm5 = vcmask 1044480   ;;  %vm1670_vm6 = vcmask 80896  }
  0x31   :  { %150 = vmatpush1.bf16.msra.mxu0 %v2246_v6  ;;  %2194 = vmatpush1.bf16.msra.mxu1 %v2246_v6  ;;  %v83_v34 = vpack.c.bf16 %v80_v33, %v80_v33  ;;  %v311_v37 = vpack.c.bf16 %v307_v36, %v306_v35  ;;  %v309_v39 = vld [vmem:[%s2920_s0 + $0x1a] sm:$0xff]  ;;  %v310_v41 = vld [vmem:[%s2920_s0 + $0x22] sm:$0x3] }
  0x32   :  { %245 = vmatprep.subr.bf16.mxu0 %v2249_v9  ;;  %v312_v40 = vpack.c.bf16 %v309_v39, %v308_v38  ;;  %v313_v42 = vpack.c.bf16 %v310_v41, %v310_v41  ;;  %v2265_v43 = vld [vmem:[%s2927_s7] sm:$0xff]   ;;  %v2266_v41 = vld [vmem:[%s2927_s7 + $0x8] ss:$0 sps:$4 sm:$0x33]  }
  0x33   :  { %v431_v56 = vld [vmem:[%s2922_s2] sm:$0x3] }
  0x34   :  { %1928 = vmatmul.mubr.msk.bf16.vlgmr.msra.gmra.mrb[0].mxu0 %vm135_vm0, %v95_v10  ;;  %1930 = vmatmul.mubr.msk.bf16.vlgmr.msra.gmra.mrb[0].mxu1 %vm135_vm0, %v97_v14  ;;  %v436_v59 = vrot.slane %v431_v56, %v2713_v53  ;;  %v440_v60 = vrot.slane %v431_v56, %v2718_v57  ;;  %v2286_v56 = vld [vmem:[%s2923_s3 + $0xd4] ss:$8 sps:$4 sm:$0xff]  }
  0x35   :  { %246 = vmatpush1.bf16.msra.mxu0 %v2247_v11  ;;  %187 = vmatprep.mubr.bf16.mxu0 %v2489_v0 }
  0x36   :  { %247 = vmatprep.subr.bf16.mxu0 %v2252_v12  ;;  %2159 = vmatprep.mubr.msk.bf16.mxu1 %vm482_vm1, %v2265_v43  ;;  %v2271_v43 = vld [vmem:[%s2923_s3 + $0x84] ss:$8 sps:$4 sm:$0xff]  }
  0x39   :  { %248 = vmatpush1.bf16.msra.mxu0 %v2250_v17 }
  0x3a   :  { %249 = vmatprep.subr.bf16.mxu0 %v2255_v18 }
  0x3c   :  { %1929 = vmatmul.mubr.msk.bf16.gmra.mrb[4].mxu0 %vm135_vm0, %v96_v20 }
  0x3d   :  { %250 = vmatpush1.bf16.msra.mxu0 %v2253_v19  ;;  %277 = vmatprep.mubr.bf16.mxu0 %v2489_v0 }
  0x3e   :  { %360 = vmatprep.subr.bf16.mxu0 %v2258_v21 }
  0x44   :  { %1937 = vmatmul.mubr.msk.bf16.vlgmr.msra.gmra.mrb[0].mxu0 %vm135_vm0, %v81_v25 }
  0x45   :  { %287 = vmatprep.mubr.bf16.mxu0 %v2489_v0  ;;  %361 = vmatpush1.bf16.msra.mxu0 %v2256_v24 }
  0x46   :  { %362 = vmatprep.subr.bf16.mxu0 %v2261_v26 }
  0x49   :  { %363 = vmatpush1.bf16.msra.mxu0 %v2259_v29 }
  0x4a   :  { %364 = vmatprep.subr.bf16.mxu0 %v2264_v30 }
  0x4c   :  { %1938 = vmatmul.mubr.msk.bf16.gmra.mrb[4].mxu0 %vm135_vm0, %v82_v32 }
  0x4d   :  { %297 = vmatprep.mubr.bf16.mxu0 %v2489_v0  ;;  %365 = vmatpush1.bf16.msra.mxu0 %v2262_v31 }
  0x54   :  { %1939 = vmatmul.mubr.msk.bf16.gmra.mrb[8].mxu0 %vm135_vm0, %v83_v34 }
  0x55   :  { %392 = vmatprep.mubr.bf16.mxu0 %v2489_v0 }
  0x5c   :  { %1952 = vmatmul.mubr.msk.bf16.vlgmr.msra.gmra.mrb[0].mxu0 %vm135_vm0, %v311_v37 }
  0x5d   :  { %402 = vmatprep.mubr.bf16.mxu0 %v2489_v0 }
  0x64   :  { %1953 = vmatmul.mubr.msk.bf16.gmra.mrb[4].mxu0 %vm135_vm0, %v312_v40 }
  0x65   :  { %412 = vmatprep.mubr.bf16.mxu0 %v2489_v0 }
  0x6c   :  { %1954 = vmatmul.mubr.msk.bf16.gmra.mrb[12].mxu0 %vm135_vm0, %v313_v42  ;;  %v2267_v42 = vld [vmem:[%s2928_s8] sm:$0xff]  }
 0x107   :  { %v199_v44 = vpop.f32.mrb[0].mxu1 }
 0x108   :  { %v201_v45 = vpop.f32.mrb[1].mxu1 }
 0x109   :  { %v203_v46 = vpop.f32.mrb[2].mxu1 }
 0x10a   :  { %v204_v47 = vpop.f32.mrb[3].mxu1  ;;  %v2274_v46 = vld [vmem:[%s2923_s3 + $0x94] ss:$8 sps:$4 sm:$0xff]  }
 0x10b   :  { %v2272_v47 = vld [vmem:[%s2923_s3 + $0x90] ss:$8 sps:$4 sm:$0xff]  }
 0x127   :  { %v299_v50 = vpop.f32.mrb[8].mxu0 }
 0x128   :  { %v300_v51 = vadd.f32 %v299_v50, %v199_v44  ;;  %v301_v52 = vpop.f32.mrb[9].mxu0  ;;  %v2268_v44 = vld [vmem:[%s2928_s8 + $0x8] ss:$0 sps:$4 sm:$0x33]  }
 0x129   :  { %v302_v54 = vadd.f32 %v301_v52, %v201_v45  ;;  %v303_v55 = vpop.f32.mrb[10].mxu0  ;;  %v2269_v45 = vld [vmem:[%s2923_s3 + $0x80] ss:$8 sps:$4 sm:$0xff]   ;;  %v2278_v52 = vld [vmem:[%s2923_s3 + $0xb0] ss:$8 sps:$4 sm:$0xff]  }
 0x12a   :  { %v304_v58 = vpop.f32.mrb[11].mxu0  ;;  %v2275_v50 = vld [vmem:[%s2923_s3 + $0xa0] ss:$8 sps:$4 sm:$0xff]  }
 0x12b   :  { %v2281_v55 = vld [vmem:[%s2923_s3 + $0xc0] ss:$8 sps:$4 sm:$0xff]   ;;  %v2284_v58 = vld [vmem:[%s2923_s3 + $0xd0] ss:$8 sps:$4 sm:$0xff]  }
 0x12f   :  { %v394_v61 = vpop.f32.mrb[0].mxu0 }
 0x130   :  { %v443_v62 = vadd.f32 %v436_v59, %v394_v61  ;;  %v396_v63 = vpop.f32.mrb[1].mxu0  ;;  %v2292_v61 = vld [vmem:[%s2923_s3 + $0xf4] ss:$8 sps:$4 sm:$0xff]  }
 0x131   :  { %v444_v1 = vadd.f32 %v440_v60, %v396_v63  ;;  %v398_v2 = vpop.f32.mrb[2].mxu0  ;;  %v2295_v63 = vld [vmem:[%s2923_s3 + $0x4] ss:$8 sps:$4 sm:$0xff]  }
 0x132   :  { %v453_v3 = vmax.f32 %v443_v62, 0.0  ;;  %v445_v4 = vadd.f32 %v436_v59, %v398_v2  ;;  %v400_v5 = vpop.f32.mrb[3].mxu0  ;;  %v2290_v62 = vld [vmem:[%s2923_s3 + $0xf0] ss:$8 sps:$4 sm:$0xff]  }
 0x133   :  { %v454_v6 = vmax.f32 %v444_v1, 0.0  ;;  %v446_v7 = vadd.f32 %v440_v60, %v400_v5 }
 0x134   :  { %v455_v8 = vmax.f32 %v445_v4, 0.0 }
 0x135   :  { %v463_v9 = vmax.f32 %v453_v3, %v454_v6  ;;  %v456_v10 = vmax.f32 %v446_v7, 0.0 }
 0x137   :  { %v464_v11 = vmax.f32 %v455_v8, %v456_v10  ;;  %v404_v12 = vpop.f32.mrb[4].mxu0 }
 0x138   :  { %v447_v13 = vadd.f32 %v436_v59, %v404_v12  ;;  %v406_v14 = vpop.f32.mrb[5].mxu0 }
 0x139   :  { %v468_v15 = vpack.c.bf16 %v464_v11, %v463_v9  ;;  %v448_v16 = vadd.f32 %v440_v60, %v406_v14  ;;  %v408_v17 = vpop.f32.mrb[6].mxu0 }
 0x13a   :  { %v457_v18 = vmax.f32 %v447_v13, 0.0  ;;  %v449_v19 = vadd.f32 %v436_v59, %v408_v17  ;;  %v410_v20 = vpop.f32.mrb[7].mxu0  ;;  %v2293_v13 = vld [vmem:[%s2923_s3] ss:$8 sps:$4 sm:$0xff]   ;;  %v2298_v17 = vld [vmem:[%s2923_s3 + $0x14] ss:$8 sps:$4 sm:$0xff]  }
 0x13b   :  { %v458_v21 = vmax.f32 %v448_v16, 0.0  ;;  %v450_v22 = vadd.f32 %v440_v60, %v410_v20  ;;  %2153 = vmatprep.subr.bf16.mxu1 %v468_v15 }
 0x13c   :  { %v459_v23 = vmax.f32 %v449_v19, 0.0  ;;  %2154 = vmatpush3.bf16.msra.mxu1 %v468_v15  ;;  %v2301_v19 = vld [vmem:[%s2923_s3 + $0x24] ss:$8 sps:$4 sm:$0xff]  }
 0x13d   :  { %v465_v24 = vmax.f32 %v457_v18, %v458_v21  ;;  %v460_v25 = vmax.f32 %v450_v22, 0.0  ;;  %v2296_v18 = vld [vmem:[%s2923_s3 + $0x10] ss:$8 sps:$4 sm:$0xff]   ;;  %v2299_v21 = vld [vmem:[%s2923_s3 + $0x20] ss:$8 sps:$4 sm:$0xff]  }
 0x13f   :  { %v466_v26 = vmax.f32 %v459_v23, %v460_v25  ;;  %v414_v27 = vpop.f32.mrb[12].mxu0  ;;  %v2304_v23 = vld [vmem:[%s2923_s3 + $0x34] ss:$8 sps:$4 sm:$0xff]   ;;  %v2307_v25 = vld [vmem:[%s2923_s3 + $0x44] ss:$8 sps:$4 sm:$0xff]  }
 0x140   :  { %v429_v28 = vadd.f32 %v414_v27, %v300_v51  ;;  %v416_v29 = vpop.f32.mrb[13].mxu0  ;;  %v2280_v51 = vld [vmem:[%s2923_s3 + $0xb4] ss:$8 sps:$4 sm:$0xff]  }
 0x141   :  { %v469_v30 = vpack.c.bf16 %v466_v26, %v465_v24  ;;  %v430_v31 = vadd.f32 %v416_v29, %v302_v54  ;;  %v418_v32 = vpop.f32.mrb[14].mxu0  ;;  %v2283_v54 = vld [vmem:[%s2923_s3 + $0xc4] ss:$8 sps:$4 sm:$0xff]   ;;  %v2302_v24 = vld [vmem:[%s2923_s3 + $0x30] ss:$8 sps:$4 sm:$0xff]  }
 0x142   :  { %v451_v33 = vadd.f32 %v436_v59, %v429_v28  ;;  %v419_v34 = vpop.f32.mrb[15].mxu0  ;;  %v2289_v59 = vld [vmem:[%s2923_s3 + $0xe4] ss:$8 sps:$4 sm:$0xff]   ;;  %v2305_v26 = vld [vmem:[%s2923_s3 + $0x40] ss:$8 sps:$4 sm:$0xff]  }
 0x143   :  { %v452_v35 = vadd.f32 %v440_v60, %v430_v31  ;;  %2155 = vmatprep.subr.bf16.mxu1 %v469_v30  ;;  %v2287_v60 = vld [vmem:[%s2923_s3 + $0xe0] ss:$8 sps:$4 sm:$0xff]   ;;  %v2310_v27 = vld [vmem:[%s2923_s3 + $0x54] ss:$8 sps:$4 sm:$0xff]   ;;  %v2308_v28 = vld [vmem:[%s2923_s3 + $0x50] ss:$8 sps:$4 sm:$0xff]  }
 0x144   :  { %v461_v36 = vmax.f32 %v451_v33, 0.0  ;;  %2156 = vmatpush3.bf16.msra.mxu1 %v469_v30  ;;  %v2313_v29 = vld [vmem:[%s2923_s3 + $0x64] ss:$8 sps:$4 sm:$0xff]   ;;  %v2316_v31 = vld [vmem:[%s2923_s3 + $0x74] ss:$8 sps:$4 sm:$0xff]  }
 0x145   :  { %v462_v37 = vmax.f32 %v452_v35, 0.0  ;;  %v2314_v32 = vld [vmem:[%s2923_s3 + $0x70] ss:$8 sps:$4 sm:$0xff]   ;;  %v2319_v33 = vld [vmem:[%s2923_s3 + $0x104] ss:$8 sps:$4 sm:$0xff]  }
 0x146   :  { %v2317_v34 = vld [vmem:[%s2923_s3 + $0x100] ss:$8 sps:$4 sm:$0xff]   ;;  %v2322_v35 = vld [vmem:[%s2923_s3 + $0x114] ss:$8 sps:$4 sm:$0xff]  }
 0x147   :  { %v467_v38 = vmax.f32 %v461_v36, %v462_v37  ;;  %v2320_v36 = vld [vmem:[%s2923_s3 + $0x110] ss:$8 sps:$4 sm:$0xff]   ;;  %v2325_v37 = vld [vmem:[%s2923_s3 + $0x124] ss:$8 sps:$4 sm:$0xff]  }
 0x149   :  { %v470_v39 = vpack.c.bf16 %v467_v38, %v467_v38 }
 0x14b   :  { %2227 = vmatprep.subr.msk.bf16.mxu1 %vm489_vm2, %v470_v39  ;;  %v491_v40 = vsel %vm489_vm2, %v470_v39, 0 }
 0x14c   :  { %2158 = vmatpush3.bf16.msra.mxu1 %v491_v40 }
 0x14d   :  { %2163 = vmatprep.subr.bf16.mxu1 %v468_v15 }
 0x14f   :  { %2160 = vmatmul.mubr.msk.bf16.vlgmr.msra.gmra.mrb[4].mxu1 %vm482_vm1, %v2266_v41  ;;  %v2328_v41 = vld [vmem:[%s2923_s3 + $0x134] ss:$8 sps:$4 sm:$0xff]  }
 0x150   :  { %2164 = vmatpush3.bf16.msra.mxu1 %v468_v15  ;;  %2169 = vmatprep.mubr.msk.bf16.mxu1 %vm482_vm1, %v2267_v42  ;;  %v2326_v42 = vld [vmem:[%s2923_s3 + $0x130] ss:$8 sps:$4 sm:$0xff]  }
 0x151   :  { %2165 = vmatprep.subr.bf16.mxu1 %v469_v30 }
 0x154   :  { %2166 = vmatpush3.bf16.msra.mxu1 %v469_v30  ;;  %v2311_v30 = vld [vmem:[%s2923_s3 + $0x60] ss:$8 sps:$4 sm:$0xff]  }
 0x155   :  { %2228 = vmatprep.subr.msk.bf16.mxu1 %vm489_vm2, %v470_v39  ;;  %v2323_v39 = vld [vmem:[%s2923_s3 + $0x120] ss:$8 sps:$4 sm:$0xff]  }
 0x158   :  { %2168 = vmatpush3.bf16.msra.mxu1 %v491_v40 }
 0x159   :  { %735 = vmatprep.subr.bf16.mxu1 %v2271_v43  ;;  %v2331_v43 = vld [vmem:[%s2923_s3 + $0x144] ss:$8 sps:$4 sm:$0xff]  }
 0x15b   :  { %2170 = vmatmul.mubr.msk.bf16.vlgmr.msra.gmra.mrb[8].mxu1 %vm482_vm1, %v2268_v44  ;;  %v2329_v44 = vld [vmem:[%s2923_s3 + $0x140] ss:$8 sps:$4 sm:$0xff]  }
 0x15c   :  { %736 = vmatpush1.bf16.msra.mxu1 %v2269_v45  ;;  %767 = vmatprep.mubr.bf16.mxu1 %v2489_v0  ;;  %v2334_v45 = vld [vmem:[%s2923_s3 + $0x154] ss:$8 sps:$4 sm:$0xff]  }
 0x15d   :  { %737 = vmatprep.subr.bf16.mxu1 %v2274_v46  ;;  %v2332_v46 = vld [vmem:[%s2923_s3 + $0x150] ss:$8 sps:$4 sm:$0xff]  }
 0x160   :  { %738 = vmatpush1.bf16.msra.mxu1 %v2272_v47  ;;  %v2337_v47 = vld [vmem:[%s2923_s3 + $0x164] ss:$8 sps:$4 sm:$0xff]  }
 0x161   :  { %739 = vmatprep.subr.bf16.mxu1 %v2277_v49  ;;  %v2335_v49 = vld [vmem:[%s2923_s3 + $0x160] ss:$8 sps:$4 sm:$0xff]  }
 0x164   :  { %740 = vmatpush1.bf16.msra.mxu1 %v2275_v50  ;;  %v2340_v50 = vld [vmem:[%s2923_s3 + $0x174] ss:$8 sps:$4 sm:$0xff]  }
 0x165   :  { %741 = vmatprep.subr.bf16.mxu1 %v2280_v51  ;;  %v2338_v51 = vld [vmem:[%s2923_s3 + $0x170] ss:$8 sps:$4 sm:$0xff]  }
 0x168   :  { %742 = vmatpush1.bf16.msra.mxu1 %v2278_v52 }
 0x169   :  { %743 = vmatprep.subr.bf16.mxu1 %v2283_v54 }
 0x16c   :  { %744 = vmatpush1.bf16.msra.mxu1 %v2281_v55 }
 0x16d   :  { %745 = vmatprep.subr.bf16.mxu1 %v2286_v56 }
 0x170   :  { %746 = vmatpush1.bf16.msra.mxu1 %v2284_v58 }
 0x171   :  { %747 = vmatprep.subr.bf16.mxu1 %v2289_v59  ;;  %v2490_v59 = vmov 0.0  }
 0x172   :  { %2173 = vmatprep.subr.bf16.mxu0 %v2490_v59  ;;  %2177 = vmatprep.mubr.msk.bf16.mxu0 %vm2491_vm3, %v2490_v59 }
 0x174   :  { %748 = vmatpush1.bf16.msra.mxu1 %v2287_v60 }
 0x175   :  { %749 = vmatprep.subr.bf16.mxu1 %v2292_v61 }
 0x178   :  { %750 = vmatpush1.bf16.msra.mxu1 %v2290_v62 }
 0x179   :  { %866 = vmatprep.subr.bf16.mxu1 %v2295_v63 }
 0x222   :  { %v2161_v1 = vpop.f32.mrb[4].mxu1 }
 0x223   :  { %v527_v2 = vpop.f32.mrb[5].mxu1 }
 0x224   :  { %v2162_v3 = vpop.f32.mrb[6].mxu1 }
 0x225   :  { %v530_v4 = vpop.f32.mrb[7].mxu1 }
 0x22e   :  { %v2171_v5 = vpop.f32.mrb[8].mxu1 }
 0x22f   :  { %v608_v6 = vmax.f32 %v2161_v1, %v2171_v5  ;;  %v592_v7 = vpop.f32.mrb[9].mxu1 }
 0x230   :  { %v606_v8 = vmax.f32 %v527_v2, %v592_v7  ;;  %v2172_v9 = vpop.f32.mrb[10].mxu1  ;;  %v1076_v7 = vld [vmem:[%s2924_s4] sm:$0x3] }
 0x231   :  { %611 = vst [vmem:[#allocation2 + $0x10] sm:$0xf] %v608_v6  ;;  %v595_v10 = vpop.f32.mrb[11].mxu1  ;;  %v1085_v9 = vrot.slane %v1076_v7, %v2718_v57 }
 0x232   :  { %609 = vst [vmem:[#allocation2] sm:$0xff] %v606_v8  ;;  %v607_v11 = vmax.f32 %v530_v4, %v595_v10 }
 0x234   :  { %610 = vst [vmem:[#allocation2 + $0x8] sm:$0xff] %v607_v11  ;;  %v615_v12 = vpack.c.bf16 %v607_v11, %v606_v8  ;;  %v1081_v8 = vrot.slane %v1076_v7, %v2713_v53  ;;  %v2367_v7 = vld [vmem:[#allocation4] ss:$8 sps:$4 sm:$0xff]  }
 0x238   :  { %v635_v20 = vld [vmem:[#allocation2 + $0x11] sm:$0x3] }
 0x239   :  { %v637_v22 = vpack.c.bf16 %v635_v20, %v635_v20  ;;  %v614_v38 = vld [vmem:[#allocation2 + $0x10] sm:$0x3]  ;;  %v919_v56 = vld [vmem:[#allocation2 + $0x12] sm:$0x3] }
 0x23a   :  { %v616_v40 = vpack.c.bf16 %v614_v38, %v614_v38  ;;  %v921_v58 = vpack.c.bf16 %v919_v56, %v919_v56  ;;  %v2341_v38 = vld [vmem:[%s2929_s9] sm:$0x3f]  }
 0x23b   :  { %v633_v14 = vld [vmem:[#allocation2 + $0x1] sm:$0xff]  ;;  %v634_v15 = vld [vmem:[#allocation2 + $0x9] sm:$0xff] }
 0x23c   :  { %v636_v16 = vpack.c.bf16 %v634_v15, %v633_v14  ;;  %v917_v52 = vld [vmem:[#allocation2 + $0x2] sm:$0xff]  ;;  %v918_v54 = vld [vmem:[#allocation2 + $0xa] sm:$0xff] }
 0x23d   :  { %v920_v55 = vpack.c.bf16 %v918_v54, %v917_v52  ;;  %v2358_v52 = vld [vmem:[#allocation4 + $0xd0] ss:$8 sps:$4 sm:$0xff]   ;;  %v2363_v54 = vld [vmem:[#allocation4 + $0xe4] ss:$8 sps:$4 sm:$0xff]   ;;  %v2366_v56 = vld [vmem:[#allocation4 + $0xf4] ss:$8 sps:$4 sm:$0xff]  }
 0x23e   :  { %768 = vmatmul.mubr.bf16.vlgmr.msra.gmra.mrb[12].mxu1 %v636_v16 }
 0x23f   :  { %867 = vmatpush1.bf16.msra.mxu1 %v2293_v13  ;;  %777 = vmatprep.mubr.bf16.mxu1 %v2489_v0 }
 0x240   :  { %868 = vmatprep.subr.bf16.mxu1 %v2298_v17 }
 0x243   :  { %869 = vmatpush1.bf16.msra.mxu1 %v2296_v18 }
 0x244   :  { %870 = vmatprep.subr.bf16.mxu1 %v2301_v19 }
 0x246   :  { %778 = vmatmul.mubr.bf16.gmra.mrb[16].mxu1 %v637_v22 }
 0x247   :  { %871 = vmatpush1.bf16.msra.mxu1 %v2299_v21  ;;  %898 = vmatprep.mubr.bf16.mxu1 %v2489_v0 }
 0x248   :  { %872 = vmatprep.subr.bf16.mxu1 %v2304_v23 }
 0x24b   :  { %873 = vmatpush1.bf16.msra.mxu1 %v2302_v24 }
 0x24c   :  { %874 = vmatprep.subr.bf16.mxu1 %v2307_v25 }
 0x24f   :  { %875 = vmatpush1.bf16.msra.mxu1 %v2305_v26 }
 0x250   :  { %876 = vmatprep.subr.bf16.mxu1 %v2310_v27 }
 0x253   :  { %877 = vmatpush1.bf16.msra.mxu1 %v2308_v28 }
 0x254   :  { %878 = vmatprep.subr.bf16.mxu1 %v2313_v29 }
 0x257   :  { %879 = vmatpush1.bf16.msra.mxu1 %v2311_v30 }
 0x258   :  { %880 = vmatprep.subr.bf16.mxu1 %v2316_v31 }
 0x25b   :  { %881 = vmatpush1.bf16.msra.mxu1 %v2314_v32 }
 0x25c   :  { %1019 = vmatprep.subr.bf16.mxu1 %v2319_v33 }
 0x25e   :  { %899 = vmatmul.mubr.bf16.vlgmr.msra.gmra.mrb[12].mxu1 %v615_v12 }
 0x25f   :  { %1020 = vmatpush1.bf16.msra.mxu1 %v2317_v34  ;;  %908 = vmatprep.mubr.bf16.mxu1 %v2489_v0 }
 0x260   :  { %1021 = vmatprep.subr.bf16.mxu1 %v2322_v35 }
 0x263   :  { %1022 = vmatpush1.bf16.msra.mxu1 %v2320_v36 }
 0x264   :  { %1023 = vmatprep.subr.bf16.mxu1 %v2325_v37 }
 0x266   :  { %909 = vmatmul.mubr.bf16.gmra.mrb[20].mxu1 %v616_v40  ;;  %v2342_v40 = vld [vmem:[%s2930_s10] sm:$0x3f]  }
 0x267   :  { %1024 = vmatpush1.bf16.msra.mxu1 %v2323_v39  ;;  %1051 = vmatprep.mubr.bf16.mxu1 %v2489_v0  ;;  %v2345_v39 = vld [vmem:[#allocation4 + $0x84] ss:$8 sps:$4 sm:$0xff]  }
 0x268   :  { %1025 = vmatprep.subr.bf16.mxu1 %v2328_v41  ;;  %v2343_v41 = vld [vmem:[#allocation4 + $0x80] ss:$8 sps:$4 sm:$0xff]  }
 0x26b   :  { %1026 = vmatpush1.bf16.msra.mxu1 %v2326_v42  ;;  %v2348_v42 = vld [vmem:[#allocation4 + $0x94] ss:$8 sps:$4 sm:$0xff]  }
 0x26c   :  { %1027 = vmatprep.subr.bf16.mxu1 %v2331_v43  ;;  %v2346_v43 = vld [vmem:[#allocation4 + $0x90] ss:$8 sps:$4 sm:$0xff]  }
 0x26f   :  { %1028 = vmatpush1.bf16.msra.mxu1 %v2329_v44  ;;  %v2351_v44 = vld [vmem:[#allocation4 + $0xa4] ss:$8 sps:$4 sm:$0xff]  }
 0x270   :  { %1029 = vmatprep.subr.bf16.mxu1 %v2334_v45  ;;  %v2349_v45 = vld [vmem:[#allocation4 + $0xa0] ss:$8 sps:$4 sm:$0xff]  }
 0x273   :  { %1030 = vmatpush1.bf16.msra.mxu1 %v2332_v46  ;;  %v2354_v46 = vld [vmem:[#allocation4 + $0xb4] ss:$8 sps:$4 sm:$0xff]  }
 0x274   :  { %1031 = vmatprep.subr.bf16.mxu1 %v2337_v47  ;;  %v2352_v47 = vld [vmem:[#allocation4 + $0xb0] ss:$8 sps:$4 sm:$0xff]  }
 0x277   :  { %1032 = vmatpush1.bf16.msra.mxu1 %v2335_v49  ;;  %v2355_v49 = vld [vmem:[#allocation4 + $0xc0] ss:$8 sps:$4 sm:$0xff]  }
 0x278   :  { %1033 = vmatprep.subr.bf16.mxu1 %v2340_v50  ;;  %v2357_v50 = vld [vmem:[#allocation4 + $0xc4] ss:$8 sps:$4 sm:$0xff]  }
 0x27b   :  { %1034 = vmatpush1.bf16.msra.mxu1 %v2338_v51  ;;  %v2360_v51 = vld [vmem:[#allocation4 + $0xd4] ss:$8 sps:$4 sm:$0xff]  }
 0x27e   :  { %1052 = vmatmul.mubr.bf16.vlgmr.msra.gmra.mrb[12].mxu1 %v920_v55  ;;  %v2361_v55 = vld [vmem:[#allocation4 + $0xe0] ss:$8 sps:$4 sm:$0xff]  }
 0x27f   :  { %1061 = vmatprep.mubr.bf16.mxu1 %v2489_v0 }
 0x286   :  { %1062 = vmatmul.mubr.bf16.gmra.mrb[24].mxu1 %v921_v58  ;;  %v2364_v58 = vld [vmem:[#allocation4 + $0xf0] ss:$8 sps:$4 sm:$0xff]  }
 0x287   :  { %1713 = vmatprep.mubr.bf16.mxu1 %v2489_v0 }
 0x319   :  { %v779_v60 = vpop.f32.mrb[16].mxu1 }
 0x31a   :  { %v781_v61 = vpop.f32.mrb[17].mxu1 }
 0x31b   :  { %v783_v62 = vpop.f32.mrb[18].mxu1 }
 0x31c   :  { %v784_v63 = vpop.f32.mrb[19].mxu1 }
 0x339   :  { %v910_v1 = vpop.f32.mrb[20].mxu1 }
 0x33a   :  { %v911_v2 = vadd.f32 %v910_v1, %v779_v60  ;;  %v912_v3 = vpop.f32.mrb[21].mxu1 }
 0x33b   :  { %v913_v4 = vadd.f32 %v912_v3, %v781_v61  ;;  %v914_v5 = vpop.f32.mrb[22].mxu1 }
 0x33c   :  { %v915_v6 = vpop.f32.mrb[23].mxu1 }
 0x351   :  { %v1053_v10 = vpop.f32.mrb[12].mxu1 }
 0x352   :  { %v1088_v11 = vadd.f32 %v1081_v8, %v1053_v10  ;;  %v1055_v12 = vpop.f32.mrb[13].mxu1 }
 0x353   :  { %v1089_v13 = vadd.f32 %v1085_v9, %v1055_v12  ;;  %v1057_v14 = vpop.f32.mrb[14].mxu1  ;;  %v2370_v12 = vld [vmem:[#allocation4 + $0x10] ss:$8 sps:$4 sm:$0xff]  }
 0x354   :  { %v1094_v15 = vmax.f32 %v1088_v11, 0.0  ;;  %v1090_v16 = vadd.f32 %v1081_v8, %v1057_v14  ;;  %v1059_v17 = vpop.f32.mrb[15].mxu1  ;;  %v2372_v11 = vld [vmem:[#allocation4 + $0x14] ss:$8 sps:$4 sm:$0xff]   ;;  %v2373_v14 = vld [vmem:[#allocation4 + $0x20] ss:$8 sps:$4 sm:$0xff]  }
 0x355   :  { %v1095_v18 = vmax.f32 %v1089_v13, 0.0  ;;  %v1091_v19 = vadd.f32 %v1085_v9, %v1059_v17  ;;  %v2375_v13 = vld [vmem:[#allocation4 + $0x24] ss:$8 sps:$4 sm:$0xff]  }
 0x356   :  { %v1096_v20 = vmax.f32 %v1090_v16, 0.0  ;;  %v2376_v16 = vld [vmem:[#allocation4 + $0x30] ss:$8 sps:$4 sm:$0xff]   ;;  %v2381_v17 = vld [vmem:[#allocation4 + $0x44] ss:$8 sps:$4 sm:$0xff]  }
 0x357   :  { %v1100_v21 = vmax.f32 %v1094_v15, %v1095_v18  ;;  %v1097_v22 = vmax.f32 %v1091_v19, 0.0  ;;  %v2378_v15 = vld [vmem:[#allocation4 + $0x34] ss:$8 sps:$4 sm:$0xff]   ;;  %v2379_v18 = vld [vmem:[#allocation4 + $0x40] ss:$8 sps:$4 sm:$0xff]  }
 0x358   :  { %v2384_v19 = vld [vmem:[#allocation4 + $0x54] ss:$8 sps:$4 sm:$0xff]  }
 0x359   :  { %v1101_v23 = vmax.f32 %v1096_v20, %v1097_v22  ;;  %v1063_v24 = vpop.f32.mrb[24].mxu1  ;;  %v2382_v20 = vld [vmem:[#allocation4 + $0x50] ss:$8 sps:$4 sm:$0xff]   ;;  %v2385_v22 = vld [vmem:[#allocation4 + $0x60] ss:$8 sps:$4 sm:$0xff]  }
 0x35a   :  { %v1074_v25 = vadd.f32 %v1063_v24, %v911_v2  ;;  %v1065_v26 = vpop.f32.mrb[25].mxu1  ;;  %v2388_v24 = vld [vmem:[#allocation4 + $0x70] ss:$8 sps:$4 sm:$0xff]  }
 0x35b   :  { %v1103_v27 = vpack.c.bf16 %v1101_v23, %v1100_v21  ;;  %v1075_v28 = vadd.f32 %v1065_v26, %v913_v4  ;;  %v1067_v29 = vpop.f32.mrb[26].mxu1  ;;  %v2387_v21 = vld [vmem:[#allocation4 + $0x64] ss:$8 sps:$4 sm:$0xff]   ;;  %v2390_v23 = vld [vmem:[#allocation4 + $0x74] ss:$8 sps:$4 sm:$0xff]  }
 0x35c   :  { %v1092_v30 = vadd.f32 %v1081_v8, %v1074_v25  ;;  %v1068_v31 = vpop.f32.mrb[27].mxu1  ;;  %v2393_v25 = vld [vmem:[#allocation4 + $0x104] ss:$8 sps:$4 sm:$0xff]   ;;  %v2396_v29 = vld [vmem:[#allocation4 + $0x114] ss:$8 sps:$4 sm:$0xff]  }
 0x35d   :  { %v1093_v32 = vadd.f32 %v1085_v9, %v1075_v28  ;;  %2174 = vmatpush3.bf16.msra.mxu0 %v1103_v27  ;;  %v2399_v31 = vld [vmem:[#allocation4 + $0x124] ss:$8 sps:$4 sm:$0xff]  }
 0x35e   :  { %v1098_v33 = vmax.f32 %v1092_v30, 0.0  ;;  %2175 = vmatprep.subr.bf16.mxu0 %v2490_v59  ;;  %v2394_v30 = vld [vmem:[#allocation4 + $0x110] ss:$8 sps:$4 sm:$0xff]  }
 0x35f   :  { %v1099_v34 = vmax.f32 %v1093_v32, 0.0  ;;  %v2397_v32 = vld [vmem:[#allocation4 + $0x120] ss:$8 sps:$4 sm:$0xff]  }
 0x361   :  { %v1102_v35 = vmax.f32 %v1098_v33, %v1099_v34  ;;  %v2402_v33 = vld [vmem:[#allocation4 + $0x134] ss:$8 sps:$4 sm:$0xff]   ;;  %v2400_v34 = vld [vmem:[#allocation4 + $0x130] ss:$8 sps:$4 sm:$0xff]  }
 0x363   :  { %v1104_v36 = vpack.c.bf16 %v1102_v35, %v1102_v35  ;;  %v2405_v35 = vld [vmem:[#allocation4 + $0x144] ss:$8 sps:$4 sm:$0xff]  }
 0x365   :  { %v1117_v37 = vsel %vm489_vm2, %v1104_v36, 0  ;;  %v2403_v36 = vld [vmem:[#allocation4 + $0x140] ss:$8 sps:$4 sm:$0xff]  }
 0x366   :  { %2176 = vmatpush3.bf16.msra.mxu0 %v1117_v37 }
 0x367   :  { %2181 = vmatprep.subr.bf16.mxu0 %v2490_v59 }
 0x369   :  { %2178 = vmatmul.mubr.msk.bf16.vlgmr.msra.gmra.mrb[16].mxu0 %vm1112_vm4, %v2341_v38  ;;  %v2406_v38 = vld [vmem:[#allocation4 + $0x150] ss:$8 sps:$4 sm:$0xff]  }
 0x36a   :  { %2182 = vmatpush3.bf16.msra.mxu0 %v1103_v27  ;;  %2185 = vmatprep.mubr.msk.bf16.mxu0 %vm2491_vm3, %v2490_v59  ;;  %v2391_v27 = vld [vmem:[#allocation4 + $0x100] ss:$8 sps:$4 sm:$0xff]  }
 0x36b   :  { %2183 = vmatprep.subr.bf16.mxu0 %v2490_v59  ;;  %v2369_v59 = vld [vmem:[#allocation4 + $0x4] ss:$8 sps:$4 sm:$0xff]  }
 0x36e   :  { %2184 = vmatpush3.bf16.msra.mxu0 %v1117_v37  ;;  %v2408_v37 = vld [vmem:[#allocation4 + $0x154] ss:$8 sps:$4 sm:$0xff]  }
 0x36f   :  { %1334 = vmatprep.subr.bf16.mxu0 %v2345_v39  ;;  %v2411_v39 = vld [vmem:[#allocation4 + $0x164] ss:$8 sps:$4 sm:$0xff]  }
 0x371   :  { %2186 = vmatmul.mubr.msk.bf16.vlgmr.msra.gmra.mrb[20].mxu0 %vm1112_vm4, %v2342_v40  ;;  %v2414_v40 = vld [vmem:[#allocation4 + $0x174] ss:$8 sps:$4 sm:$0xff]  }
 0x372   :  { %1335 = vmatpush1.bf16.msra.mxu0 %v2343_v41  ;;  %1366 = vmatprep.mubr.bf16.mxu0 %v2489_v0  ;;  %v2412_v41 = vld [vmem:[#allocation4 + $0x170] ss:$8 sps:$4 sm:$0xff]  }
 0x373   :  { %1336 = vmatprep.subr.bf16.mxu0 %v2348_v42 }
 0x376   :  { %1337 = vmatpush1.bf16.msra.mxu0 %v2346_v43 }
 0x377   :  { %1338 = vmatprep.subr.bf16.mxu0 %v2351_v44 }
 0x37a   :  { %1339 = vmatpush1.bf16.msra.mxu0 %v2349_v45  ;;  %v1647_v45 = vld [vmem:[%s2926_s6] sm:$0x3] }
 0x37b   :  { %1340 = vmatprep.subr.bf16.mxu0 %v2354_v46  ;;  %v1652_v46 = vrot.slane %v1647_v45, %v2713_v53  ;;  %v1667_v53 = vld [vmem:[%s2931_s11] sm:$0x1] }
 0x37e   :  { %1341 = vmatpush1.bf16.msra.mxu0 %v2352_v47  ;;  %v1656_v47 = vrot.slane %v1647_v45, %v2718_v57  ;;  %v2416_v57 = vld [vmem:[#allocation6] sm:$0xff]  }
 0x37f   :  { %1342 = vmatprep.subr.bf16.mxu0 %v2357_v50 }
 0x382   :  { %1343 = vmatpush1.bf16.msra.mxu0 %v2355_v49 }
 0x383   :  { %1344 = vmatprep.subr.bf16.mxu0 %v2360_v51 }
 0x386   :  { %1345 = vmatpush1.bf16.msra.mxu0 %v2358_v52 }
 0x387   :  { %1346 = vmatprep.subr.bf16.mxu0 %v2363_v54 }
 0x38a   :  { %1347 = vmatpush1.bf16.msra.mxu0 %v2361_v55 }
 0x38b   :  { %1348 = vmatprep.subr.bf16.mxu0 %v2366_v56 }
 0x38e   :  { %1349 = vmatpush1.bf16.msra.mxu0 %v2364_v58 }
 0x38f   :  { %1457 = vmatprep.subr.bf16.mxu0 %v2369_v59 }
 0x43c   :  { %v1153_v60 = vpop.f32.mrb[16].mxu0 }
 0x43d   :  { %v2179_v61 = vpop.f32.mrb[17].mxu0 }
 0x43e   :  { %v1156_v62 = vpop.f32.mrb[18].mxu0 }
 0x43f   :  { %v2180_v63 = vpop.f32.mrb[19].mxu0 }
 0x444   :  { %v1204_v1 = vpop.f32.mrb[20].mxu0 }
 0x445   :  { %v1211_v2 = vmax.f32 %v1153_v60, %v1204_v1  ;;  %v2187_v3 = vpop.f32.mrb[21].mxu0 }
 0x446   :  { %v1207_v4 = vpop.f32.mrb[22].mxu0 }
 0x447   :  { %1213 = vst [vmem:[#allocation3] sm:$0xff] %v1211_v2  ;;  %v1212_v5 = vmax.f32 %v1156_v62, %v1207_v4  ;;  %v2188_v6 = vpop.f32.mrb[23].mxu0  ;;  %v2417_v4 = vld [vmem:[#allocation6 + $0x48] sm:$0xff]  }
 0x448   :  { %v2419_v6 = vld [vmem:[#allocation6 + $0x50] sm:$0xff]  }
 0x449   :  { %1214 = vst [vmem:[#allocation3 + $0x8] sm:$0xf] %v1212_v5  ;;  %v2418_v5 = vld [vmem:[#allocation6 + $0x8] sm:$0xff]  }
 0x450   :  { %v1234_v8 = vld [vmem:[#allocation3 + $0x1] sm:$0xff]  ;;  %v1235_v9 = vld [vmem:[#allocation3 + $0x9] sm:$0x3] }
 0x451   :  { %v1236_v10 = vpack.c.bf16 %v1235_v9, %v1234_v8  ;;  %v1216_v26 = vld [vmem:[#allocation3 + $0x8] sm:$0x3]  ;;  %v1501_v43 = vld [vmem:[#allocation3 + $0xa] sm:$0x3] }
 0x452   :  { %v1217_v28 = vpack.c.bf16 %v1216_v26, %v1211_v2  ;;  %v1500_v42 = vld [vmem:[#allocation3 + $0x2] sm:$0xff]  ;;  %v2415_v2 = vld [vmem:[#allocation6 + $0x40] sm:$0xff]  }
 0x453   :  { %1367 = vmatmul.mubr.bf16.vlgmr.msra.gmra.mrb[24].mxu0 %v1236_v10  ;;  %v1502_v44 = vpack.c.bf16 %v1501_v43, %v1500_v42  ;;  %v2421_v8 = vld [vmem:[#allocation6 + $0x58] sm:$0xff]   ;;  %v2423_v10 = vld [vmem:[#allocation6 + $0x60] sm:$0xff]  }
 0x454   :  { %1458 = vmatpush1.bf16.msra.mxu0 %v2367_v7  ;;  %1489 = vmatprep.mubr.bf16.mxu0 %v2489_v0  ;;  %v2420_v7 = vld [vmem:[#allocation6 + $0x10] sm:$0xff]   ;;  %v2422_v9 = vld [vmem:[#allocation6 + $0x18] sm:$0xff]  }
 0x455   :  { %1459 = vmatprep.subr.bf16.mxu0 %v2372_v11  ;;  %v2424_v11 = vld [vmem:[#allocation6 + $0x20] sm:$0xff]  }
 0x458   :  { %1460 = vmatpush1.bf16.msra.mxu0 %v2370_v12  ;;  %v2425_v12 = vld [vmem:[#allocation6 + $0x68] sm:$0xff]  }
 0x459   :  { %1461 = vmatprep.subr.bf16.mxu0 %v2375_v13  ;;  %v2426_v13 = vld [vmem:[#allocation6 + $0x28] sm:$0xff]  }
 0x45c   :  { %1462 = vmatpush1.bf16.msra.mxu0 %v2373_v14  ;;  %v2427_v14 = vld [vmem:[#allocation6 + $0x70] sm:$0xff]  }
 0x45d   :  { %1463 = vmatprep.subr.bf16.mxu0 %v2378_v15  ;;  %v2428_v15 = vld [vmem:[#allocation6 + $0x30] sm:$0xff]  }
 0x460   :  { %1464 = vmatpush1.bf16.msra.mxu0 %v2376_v16  ;;  %v2429_v16 = vld [vmem:[#allocation6 + $0x78] sm:$0xff]  }
 0x461   :  { %1465 = vmatprep.subr.bf16.mxu0 %v2381_v17  ;;  %v2430_v17 = vld [vmem:[#allocation6 + $0x38] sm:$0xff]  }
 0x464   :  { %1466 = vmatpush1.bf16.msra.mxu0 %v2379_v18 }
 0x465   :  { %1467 = vmatprep.subr.bf16.mxu0 %v2384_v19 }
 0x468   :  { %1468 = vmatpush1.bf16.msra.mxu0 %v2382_v20 }
 0x469   :  { %1469 = vmatprep.subr.bf16.mxu0 %v2387_v21 }
 0x46c   :  { %1470 = vmatpush1.bf16.msra.mxu0 %v2385_v22 }
 0x46d   :  { %1471 = vmatprep.subr.bf16.mxu0 %v2390_v23 }
 0x470   :  { %1472 = vmatpush1.bf16.msra.mxu0 %v2388_v24 }
 0x471   :  { %1600 = vmatprep.subr.bf16.mxu0 %v2393_v25  ;;  %v2097_v25 = vld [vmem:[%s2933_s13] ss:$0 sm:$0xff] }
 0x473   :  { %1490 = vmatmul.mubr.bf16.vlgmr.msra.gmra.mrb[24].mxu0 %v1217_v28 }
 0x474   :  { %1601 = vmatpush1.bf16.msra.mxu0 %v2391_v27  ;;  %1632 = vmatprep.mubr.bf16.mxu0 %v2489_v0  ;;  %v2409_v0 = vld [vmem:[#allocation4 + $0x160] ss:$8 sps:$4 sm:$0xff]  }
 0x475   :  { %1602 = vmatprep.subr.bf16.mxu0 %v2396_v29 }
 0x478   :  { %1603 = vmatpush1.bf16.msra.mxu0 %v2394_v30 }
 0x479   :  { %1604 = vmatprep.subr.bf16.mxu0 %v2399_v31 }
 0x47c   :  { %1605 = vmatpush1.bf16.msra.mxu0 %v2397_v32 }
 0x47d   :  { %1606 = vmatprep.subr.bf16.mxu0 %v2402_v33 }
 0x480   :  { %1607 = vmatpush1.bf16.msra.mxu0 %v2400_v34  ;;  %v1900_v34 = vand.u32 127, %v433_v48 }
 0x481   :  { %1608 = vmatprep.subr.bf16.mxu0 %v2405_v35 }
 0x482   :  { %vm1901_vm7 = vcmp.lt.s32.totalorder %v1900_v34, 8 }
 0x484   :  { %1609 = vmatpush1.bf16.msra.mxu0 %v2403_v36 }
 0x485   :  { %1610 = vmatprep.subr.bf16.mxu0 %v2408_v37 }
 0x488   :  { %1611 = vmatpush1.bf16.msra.mxu0 %v2406_v38 }
 0x489   :  { %1612 = vmatprep.subr.bf16.mxu0 %v2411_v39 }
 0x48c   :  { %1613 = vmatpush1.bf16.msra.mxu0 %v2409_v0 }
 0x48d   :  { %1614 = vmatprep.subr.bf16.mxu0 %v2414_v40 }
 0x490   :  { %1615 = vmatpush1.bf16.msra.mxu0 %v2412_v41 }
 0x493   :  { %1633 = vmatmul.mubr.bf16.vlgmr.msra.gmra.mrb[24].mxu0 %v1502_v44 }
 0x566   :  { %v1634_v49 = vpop.f32.mrb[24].mxu0 }
 0x567   :  { %v1659_v50 = vadd.f32 %v1652_v46, %v1634_v49  ;;  %v1636_v51 = vpop.f32.mrb[25].mxu0 }
 0x568   :  { %v1660_v52 = vadd.f32 %v1656_v47, %v1636_v51  ;;  %v1638_v54 = vpop.f32.mrb[26].mxu0 }
 0x569   :  { %v1661_v55 = vadd.f32 %v1652_v46, %v1638_v54  ;;  %v1640_v56 = vpop.f32.mrb[27].mxu0  ;;  %v1663_v59 = vmax.f32 %v1659_v50, 0.0 }
 0x56a   :  { %v1662_v58 = vadd.f32 %v1656_v47, %v1640_v56  ;;  %v1664_v61 = vmax.f32 %v1660_v52, 0.0 }
 0x56b   :  { %v1665_v60 = vmax.f32 %v1661_v55, 0.0 }
 0x56c   :  { %v1666_v62 = vmax.f32 %v1662_v58, 0.0 }
 0x56d   :  { %v1668_v63 = vpack.c.bf16 %v1665_v60, %v1663_v59 }
 0x56e   :  { %v1669_v1 = vpack.c.bf16 %v1666_v62, %v1664_v61 }
 0x56f   :  { %v1676_v3 = vsel %vm1674_vm5, %v1668_v63, 0 }
 0x570   :  { %2095 = vmatprep.subr.msk.bf16.mxu1 %vm1674_vm5, %v1669_v1 }
 0x571   :  { %1682 = vmatpush1.bf16.msra.mxu1 %v1676_v3 }
 0x572   :  { %2131 = vmatprep.subr.bf16.mxu1 %v2415_v2 }
 0x574   :  { %2096 = vmatmul.mubr.msk.bf16.vlgmr.msra.gmra.mrb[28].mxu1 %vm1670_vm6, %v1667_v53 }
 0x575   :  { %2132 = vmatpush3.bf16.msra.mxu1 %v2416_v57 }
 0x576   :  { %2133 = vmatprep.subr.bf16.mxu1 %v2417_v4 }
 0x579   :  { %2134 = vmatpush3.bf16.msra.mxu1 %v2418_v5 }
 0x57a   :  { %2135 = vmatprep.subr.bf16.mxu1 %v2419_v6 }
 0x57d   :  { %2136 = vmatpush3.bf16.msra.mxu1 %v2420_v7 }
 0x57e   :  { %2137 = vmatprep.subr.bf16.mxu1 %v2421_v8 }
 0x581   :  { %2138 = vmatpush3.bf16.msra.mxu1 %v2422_v9 }
 0x582   :  { %2139 = vmatprep.subr.bf16.mxu1 %v2423_v10 }
 0x585   :  { %2140 = vmatpush3.bf16.msra.mxu1 %v2424_v11 }
 0x586   :  { %2141 = vmatprep.subr.bf16.mxu1 %v2425_v12 }
 0x589   :  { %2142 = vmatpush3.bf16.msra.mxu1 %v2426_v13 }
 0x58a   :  { %2143 = vmatprep.subr.bf16.mxu1 %v2427_v14 }
 0x58d   :  { %2144 = vmatpush3.bf16.msra.mxu1 %v2428_v15 }
 0x58e   :  { %2145 = vmatprep.subr.bf16.mxu1 %v2429_v16 }
 0x591   :  { %2146 = vmatpush3.bf16.msra.mxu1 %v2430_v17 }
 0x647   :  { %v1715_v18 = vpop.f32.mrb[28].mxu1 }
 0x648   :  { %v1717_v19 = vpop.f32.mrb[29].mxu1  ;;  %v1722_v22 = vpack.c.bf16 %v1715_v18, %v1715_v18 }
 0x649   :  { %v1723_v20 = vpack.c.bf16 %v1717_v19, %v1717_v19  ;;  %v1719_v21 = vpop.f32.mrb[30].mxu1 }
 0x64a   :  { %v1720_v23 = vpop.f32.mrb[31].mxu1 }
 0x64b   :  { %1891 = vmatprep.mubr.bf16.mxu1 %v1723_v20 }
 0x64c   :  { %1892 = vmatmul.mubr.bf16.vlgmr.msra.gmra.mrb[32].mxu1 %v1722_v22 }
 0x71f   :  { %v2147_v24 = vpop.f32.mrb[32].mxu1 }
 0x720   :  { %v2148_v26 = vpop.f32.mrb[33].mxu1 }
 0x721   :  { %v2149_v27 = vadd.f32 %v2148_v26, %v2147_v24  ;;  %v2150_v28 = vpop.f32.mrb[34].mxu1 }
 0x722   :  { %v2151_v29 = vpop.f32.mrb[35].mxu1 }
 0x723   :  { %v1894_v30 = vadd.f32 %v2149_v27, %v2097_v25 }
 0x725   :  { %v2114_v31 = vmul.f32 -1.442695, %v1894_v30 }
 0x727   :  { %2431 = vpow2.f32 %v2114_v31 }
 0x731   :  { %v2432_v32 = vpop.eup %2431 }
 0x732   :  { %v1905_v33 = vadd.f32 1.0, %v2432_v32 }
 0x734   :  { %2433 = vrcp.f32 %v1905_v33 }
 0x73e   :  { %v2434_v35 = vpop.eup %2433 }
 0x73f   :  { %v1908_v36 = vsel %vm1901_vm7, %v2434_v35, %v1894_v30 }
 0x740   :  { %1909 = vst [vmem:[%s2934_s14] sm:$0x3] %v1908_v36 }
 0x741   :  { %1914 = vsyncpa [#allocation5], 1 }
 0x742   :  { %1915 = vsyncpa [#allocation7], 1 }

</bundles_post_ra>
